<compile_context>
chip_gen: v7x
topology: tpu7x:2x2x1
jax: 0.10.0
libtpu: 0.0.40
codegen_flags: <defaults>
</compile_context>

<pallas_src>
import numpy as np
import jax
import jax.numpy as jnp
from jax.experimental import pallas as pl
from jax.experimental.pallas import tpu as pltpu  # noqa: F401  (kept for TPU-specific tuning hooks)

SEQ_LEN = 5
EMBED = 16
NHEAD = 4
HEAD_DIM = EMBED // NHEAD
DFF = 256            # dim_feedforward (small, divisible by 64 as the head requires)
KSIZE = 5            # conv1d_kernel_size (odd)
IN_FEATURES = 15     # fixed by the reference module: nn.Conv1d(15, embed_size, ...)
BATCH = SEQ_LEN      # required by the reference PE broadcast (see NOTE above)
NTOK = SEQ_LEN * BATCH

# ---- packed-slab row offsets (all 8-sublane aligned) -------------------------------
# W16 slab: lane width 16
R16_CONV = 0                     # 80 rows : im2col conv weight (75) + [pe[b]+conv_b] (5)
R16_KT   = 80                    # 4 heads x 8-row stride (4 used) : K^T weights
R16_VO   = 112                   # 4 heads x 16 rows : fused Wv_h @ Wo_h
R16_FF2  = 176                   # 256 rows : encoder FF linear2
R16_H4   = 432                   # 64 rows  : head linear4
W16_ROWS = 496
# W4 slab: lane width 4
R4_Q  = 0                        # 4 heads x 16 rows : per-head Q weights
R4_H5 = 64                       # 16 rows : head linear5
R4_H6 = 80                       # 4 rows  : head outlayer (padded to 4 lanes, col 0 real)
W4_ROWS = 84
# W256 slab: lane width 256
R256_FF1 = 0                     # 16 rows : encoder FF linear1
R256_H1  = 16                    # 80 rows : head linear1 (seq-major slabs of 16 rows)
W256_ROWS = 96
# vecs slab rows (lane width 256, zero-padded per row)
V_BQ = 0                         # rows 0..3 : per-head Q bias (lanes 0:4)
V_BO = 4                         # out-proj bias + folded V bias (lanes 0:16)
V_LN1W, V_LN1B = 5, 6
V_FF1B, V_FF2B = 7, 8
V_LN2W, V_LN2B = 9, 10
V_H1B, V_H2B, V_H3B, V_H4B, V_H5B, V_H6B = 11, 12, 13, 14, 15, 16
VEC_ROWS = 17


# ----------------------------- fused kernel ----------------------------------------
def fused_kernel(xcol_ref, w16_ref, w4_ref, w256_ref, w128_ref, w64_ref,
                 vecs_ref, mask_ref, out_ref):
    f32 = jnp.float32
    scale = 1.0 / float(np.sqrt(HEAD_DIM))

    # --- Conv1d embedding + conv bias + positional encoding: ONE matmul.
    #     (bias & pe folded into the weight via the one-hot batch columns of xcol)
    # TODO(synk): nn.Dropout layers are treated as identity (eval-mode semantics).
    x = jnp.dot(xcol_ref[...], w16_ref[R16_CONV:R16_CONV + 80, :],
                preferred_element_type=f32)                                 # (25,16)

    # --- Multi-head self-attention over the whole flattened batch ----------
    xT = jnp.transpose(x)                                                   # (16,25), one XLU transpose
    mask = mask_ref[...]                                                    # (25,25) causal+batch-block

    # All per-head projections are independent -> issue them back-to-back so the
    # scheduler can overlap the MXU pushes (single basic block, fully unrolled).
    qs, kTs, vos = [], [], []
    for h in range(NHEAD):
        qs.append(jnp.dot(x, w4_ref[R4_Q + EMBED * h:R4_Q + EMBED * (h + 1), :],
                          preferred_element_type=f32)
                  + vecs_ref[V_BQ + h:V_BQ + h + 1, 0:HEAD_DIM])            # (25,4)
        kTs.append(jnp.dot(w16_ref[R16_KT + 8 * h:R16_KT + 8 * h + HEAD_DIM, :], xT,
                           preferred_element_type=f32))                     # (4,25)  (K bias cancels in softmax)
        vos.append(jnp.dot(x, w16_ref[R16_VO + EMBED * h:R16_VO + EMBED * (h + 1), :],
                           preferred_element_type=f32))                     # (25,16) = V_h @ Wo_h (pre-fused)

    attn = jnp.zeros((NTOK, EMBED), f32)
    for h in range(NHEAD):
        s = jnp.dot(qs[h], kTs[h], preferred_element_type=f32) * scale + mask
        m = jnp.max(s, axis=-1, keepdims=True)
        p = jnp.exp(s - m)
        p = p * pl.reciprocal(jnp.sum(p, axis=-1, keepdims=True), approx=False)
        attn = attn + jnp.dot(p, vos[h], preferred_element_type=f32)        # register accum, no scratch
    attn = attn + vecs_ref[V_BO:V_BO + 1, 0:EMBED]                          # bo + sum_h bv_h@Wo_h

    def layer_norm(val, w, b):
        mu = jnp.mean(val, axis=-1, keepdims=True)
        d = val - mu
        var = jnp.mean(d * d, axis=-1, keepdims=True)
        return d * jax.lax.rsqrt(var + 1e-5) * w + b

    y = layer_norm(x + attn, vecs_ref[V_LN1W:V_LN1W + 1, 0:EMBED],
                   vecs_ref[V_LN1B:V_LN1B + 1, 0:EMBED])                    # post-norm 1

    # --- TransformerEncoderLayer feed-forward block (relu) ------------------
    h1 = jnp.maximum(jnp.dot(y, w256_ref[R256_FF1:R256_FF1 + EMBED, :],
                             preferred_element_type=f32)
                     + vecs_ref[V_FF1B:V_FF1B + 1, :], 0.0)                 # (25,256)
    h2 = (jnp.dot(h1, w16_ref[R16_FF2:R16_FF2 + DFF, :],
                  preferred_element_type=f32)
          + vecs_ref[V_FF2B:V_FF2B + 1, 0:EMBED])
    z = layer_norm(y + h2, vecs_ref[V_LN2W:V_LN2W + 1, 0:EMBED],
                   vecs_ref[V_LN2B:V_LN2B + 1, 0:EMBED])                    # (25,16)

    # --- MLP regression head ------------------------------------------------
    # reshape((-1, S*E)) is folded into linear1: with seq-major rows,
    # z[s*B:(s+1)*B, :] is the (B,E) slab of sequence position s; keep it as a
    # single accumulation chain (MXU-resident accumulate on v7x's MRB).
    acc = jnp.zeros((BATCH, DFF), jnp.float32)
    for s_pos in range(SEQ_LEN):
        acc = acc + jnp.dot(z[s_pos * BATCH:(s_pos + 1) * BATCH, :],
                            w256_ref[R256_H1 + s_pos * EMBED:
                                     R256_H1 + (s_pos + 1) * EMBED, :],
                            preferred_element_type=f32)
    hcur = jnp.maximum(acc + vecs_ref[V_H1B:V_H1B + 1, :], 0.0)             # (5,256)
    hcur = jnp.maximum(jnp.dot(hcur, w128_ref[...], preferred_element_type=f32)
                       + vecs_ref[V_H2B:V_H2B + 1, 0:DFF // 2], 0.0)        # (5,128)
    hcur = jnp.maximum(jnp.dot(hcur, w64_ref[...], preferred_element_type=f32)
                       + vecs_ref[V_H3B:V_H3B + 1, 0:DFF // 4], 0.0)        # (5,64)
    hcur = jnp.maximum(jnp.dot(hcur, w16_ref[R16_H4:R16_H4 + 64, :],
                               preferred_element_type=f32)
                       + vecs_ref[V_H4B:V_H4B + 1, 0:DFF // 16], 0.0)       # (5,16)
    hcur = jnp.maximum(jnp.dot(hcur, w4_ref[R4_H5:R4_H5 + 16, :],
                               preferred_element_type=f32)
                       + vecs_ref[V_H5B:V_H5B + 1, 0:DFF // 64], 0.0)       # (5,4)
    out = jnp.dot(hcur, w4_ref[R4_H6:R4_H6 + 4, :], preferred_element_type=f32)
    out_ref[...] = out[:, 0:1] + vecs_ref[V_H6B:V_H6B + 1, 0:1]             # (5,1)


# ----------------------------- parameter init (deterministic, synthetic) -----------
def init_params(key):
    ks = iter(jax.random.split(key, 24))

    def rnd(shape, scale=0.1):
        return np.asarray(scale * jax.random.normal(next(ks), shape, jnp.float32))

    p = {}
    p['conv_w'] = rnd((EMBED, IN_FEATURES, KSIZE))          # PyTorch Conv1d weight
    p['conv_b'] = rnd((EMBED,), 0.01)
    p['in_proj_w'] = rnd((3 * EMBED, EMBED))                # MHA in_proj (3E, E)
    p['in_proj_b'] = rnd((3 * EMBED,), 0.01)
    p['out_w'] = rnd((EMBED, EMBED))                        # MHA out_proj (out, in)
    p['out_b'] = rnd((EMBED,), 0.01)
    p['ln1_w'] = np.ones(EMBED, np.float32); p['ln1_b'] = np.zeros(EMBED, np.float32)
    p['ln2_w'] = np.ones(EMBED, np.float32); p['ln2_b'] = np.zeros(EMBED, np.float32)
    p['ff1_w'] = rnd((DFF, EMBED)); p['ff1_b'] = rnd((DFF,), 0.01)
    p['ff2_w'] = rnd((EMBED, DFF)); p['ff2_b'] = rnd((EMBED,), 0.01)
    dims = [SEQ_LEN * EMBED, DFF, DFF // 2, DFF // 4, DFF // 16, DFF // 64, 1]
    p['head'] = [(rnd((dims[i + 1], dims[i])), rnd((dims[i + 1],), 0.01))
                 for i in range(6)]                          # PyTorch (out, in) + bias
    return p


# ----------------------------- one-time packing (host numpy, outside jit) ----------
def pack_params(p):
    E, HD = EMBED, HEAD_DIM

    # positional-encoding table (the reference adds pe[b] to batch element b)
    pos = np.arange(SEQ_LEN, dtype=np.float32)[:, None]
    div = np.exp(np.arange(0, E, 2, dtype=np.float32) * (-np.log(10000.0) / E))
    pe = np.zeros((SEQ_LEN, E), np.float32)
    pe[:, 0::2] = np.sin(pos * div)
    pe[:, 1::2] = np.cos(pos * div)

    in_w, in_b = p['in_proj_w'], p['in_proj_b']
    WqT = in_w[0:E].T                      # (in, out)
    Wk_t = in_w[E:2 * E]                   # torch (out, in): rows = K output dims
    WvT = in_w[2 * E:3 * E].T
    WoT = p['out_w'].T

    # --- W16 slab (lane width 16) ---
    w16 = np.zeros((W16_ROWS, E), np.float32)
    w16[R16_CONV:R16_CONV + 75] = p['conv_w'].transpose(2, 1, 0).reshape(KSIZE * IN_FEATURES, E)
    w16[R16_CONV + 75:R16_CONV + 80] = pe + p['conv_b'][None, :]   # pe[b] + conv bias
    for h in range(NHEAD):
        w16[R16_KT + 8 * h:R16_KT + 8 * h + HD] = Wk_t[HD * h:HD * (h + 1), :]
        w16[R16_VO + E * h:R16_VO + E * (h + 1)] = \
            WvT[:, HD * h:HD * (h + 1)] @ WoT[HD * h:HD * (h + 1), :]       # Wv_h @ Wo_h
    w16[R16_FF2:R16_FF2 + DFF] = p['ff2_w'].T
    w16[R16_H4:R16_H4 + 64] = p['head'][3][0].T

    # --- W4 slab (lane width 4) ---
    w4 = np.zeros((W4_ROWS, HD), np.float32)
    for h in range(NHEAD):
        w4[R4_Q + E * h:R4_Q + E * (h + 1)] = WqT[:, HD * h:HD * (h + 1)]
    w4[R4_H5:R4_H5 + 16] = p['head'][4][0].T
    w4[R4_H6:R4_H6 + 4, 0:1] = p['head'][5][0].T

    # --- W256 / W128 / W64 slabs ---
    w256 = np.zeros((W256_ROWS, DFF), np.float32)
    w256[R256_FF1:R256_FF1 + E] = p['ff1_w'].T
    w256[R256_H1:R256_H1 + SEQ_LEN * E] = p['head'][0][0].T
    w128 = np.ascontiguousarray(p['head'][1][0].T)
    w64 = np.ascontiguousarray(p['head'][2][0].T)

    # --- vecs slab: all small bias / LayerNorm vectors, one row each ---
    vecs = np.zeros((VEC_ROWS, DFF), np.float32)
    for h in range(NHEAD):
        vecs[V_BQ + h, :HD] = in_b[HD * h:HD * (h + 1)]
    vecs[V_BO, :E] = p['out_b'] + in_b[2 * E:3 * E] @ WoT   # bo + bv@Wo (softmax rows sum to 1)
    vecs[V_LN1W, :E] = p['ln1_w']; vecs[V_LN1B, :E] = p['ln1_b']
    vecs[V_FF1B, :DFF] = p['ff1_b']; vecs[V_FF2B, :E] = p['ff2_b']
    vecs[V_LN2W, :E] = p['ln2_w']; vecs[V_LN2B, :E] = p['ln2_b']
    hb = [p['head'][i][1] for i in range(6)]
    vecs[V_H1B, :DFF] = hb[0]
    vecs[V_H2B, :DFF // 2] = hb[1]
    vecs[V_H3B, :DFF // 4] = hb[2]
    vecs[V_H4B, :DFF // 16] = hb[3]
    vecs[V_H5B, :DFF // 64] = hb[4]
    vecs[V_H6B, :1] = hb[5]

    # combined causal + batch-block mask over the (S*B, S*B) seq-major tokens
    r = np.arange(NTOK)
    s_of, b_of = r // BATCH, r % BATCH
    mask = np.where((b_of[None, :] == b_of[:, None])
                    & (s_of[None, :] <= s_of[:, None]), 0.0, -1e30).astype(np.float32)

    return {k: jnp.asarray(v) for k, v in
            dict(w16=w16, w4=w4, w256=w256, w128=w128, w64=w64,
                 vecs=vecs, mask=mask).items()}


# ----------------------------- forward wrapper (jitted) ----------------------------
@jax.jit
def full_encoder_forward(x, packed):
    B, S, C = x.shape
    assert S == SEQ_LEN and C == IN_FEATURES
    assert B == BATCH, "reference PE broadcast requires batch == seq_len"

    # F.pad(x, (0,0,K-1,0), value=-1) then Conv1d -> im2col (pure data movement,
    # compiled once under jit), reordered seq-major (row r = s*B + b) and extended
    # with one-hot batch columns so conv bias + positional encoding fold into the
    # conv matmul inside the kernel.
    pad = KSIZE - 1
    xpad = jnp.pad(x, ((0, 0), (pad, 0), (0, 0)), constant_values=-1.0)
    xcol = jnp.concatenate([xpad[:, k:k + S, :] for k in range(KSIZE)], axis=-1)
    xcol = jnp.transpose(xcol, (1, 0, 2)).reshape(S * B, KSIZE * IN_FEATURES)
    onehot = jnp.tile(jnp.eye(BATCH, dtype=jnp.float32), (SEQ_LEN, 1))      # row r -> col r%B
    xcol_ext = jnp.concatenate([xcol, onehot], axis=-1)                     # (25, 80)

    # Single fused, gridless pallas_call: 8 operands (packed slabs), everything
    # VMEM-resident, nothing to pipeline.
    return pl.pallas_call(
        fused_kernel,
        out_shape=jax.ShapeDtypeStruct((BATCH, 1), jnp.float32),
    )(xcol_ext, packed['w16'], packed['w4'], packed['w256'],
      packed['w128'], packed['w64'], packed['vecs'], packed['mask'])


if __name__ == "__main__":
    key = jax.random.PRNGKey(0)
    k_x, k_p = jax.random.split(key)
    x = jax.random.normal(k_x, (BATCH, SEQ_LEN, IN_FEATURES), jnp.float32)
    params = init_params(k_p)
    packed = pack_params(params)       # one-time packing, device-resident thereafter
    out = full_encoder_forward(x, packed)
    out = jax.block_until_ready(out)
    assert out.shape == (BATCH, 1)
    assert bool(jnp.all(jnp.isfinite(out)))
    print("KERNEL_OK")
</pallas_src>

<mosaic_0001>
module attributes {stable_mosaic.version = 11 : i64} {
  func.func @fused_kernel(%arg0: memref<25x80xf32, #tpu.memory_space<vmem>>, %arg1: memref<496x16xf32, #tpu.memory_space<vmem>>, %arg2: memref<84x4xf32, #tpu.memory_space<vmem>>, %arg3: memref<96x256xf32, #tpu.memory_space<vmem>>, %arg4: memref<256x128xf32, #tpu.memory_space<vmem>>, %arg5: memref<128x64xf32, #tpu.memory_space<vmem>>, %arg6: memref<17x256xf32, #tpu.memory_space<vmem>>, %arg7: memref<25x25xf32, #tpu.memory_space<vmem>>, %arg8: memref<5x1xf32, #tpu.memory_space<vmem>>) attributes {dimension_semantics = [], scalar_prefetch = 0 : i64, scratch_operands = 0 : i64, tpu.core_type = #tpu.core_type<tc>} {
    %c0 = arith.constant 0 : index
    %c0_0 = arith.constant 0 : index
    %0 = vector.load %arg0[%c0, %c0_0] : memref<25x80xf32, #tpu.memory_space<vmem>>, vector<25x80xf32>
    %c0_1 = arith.constant 0 : index
    %c0_2 = arith.constant 0 : index
    %1 = vector.load %arg1[%c0_1, %c0_2] : memref<496x16xf32, #tpu.memory_space<vmem>>, vector<80x16xf32>
    %cst = arith.constant dense<0.000000e+00> : vector<25x16xf32>
    %2 = tpu.matmul %0, %1, %cst {dimension_numbers = #tpu.dot_dimension_numbers<[1], [0], [0], [1], [0, 0, 1, 1], [], []>} : vector<25x80xf32>, vector<80x16xf32>, vector<25x16xf32> -> vector<25x16xf32>
    %3 = tpu.transpose %2, [1, 0] : vector<25x16xf32> -> vector<16x25xf32>
    %c0_3 = arith.constant 0 : index
    %c0_4 = arith.constant 0 : index
    %4 = vector.load %arg7[%c0_3, %c0_4] : memref<25x25xf32, #tpu.memory_space<vmem>>, vector<25x25xf32>
    %c0_5 = arith.constant 0 : index
    %c0_6 = arith.constant 0 : index
    %5 = vector.load %arg2[%c0_5, %c0_6] : memref<84x4xf32, #tpu.memory_space<vmem>>, vector<16x4xf32>
    %cst_7 = arith.constant dense<0.000000e+00> : vector<25x4xf32>
    %6 = tpu.matmul %2, %5, %cst_7 {dimension_numbers = #tpu.dot_dimension_numbers<[1], [0], [0], [1], [0, 0, 1, 1], [], []>} : vector<25x16xf32>, vector<16x4xf32>, vector<25x4xf32> -> vector<25x4xf32>
    %c0_8 = arith.constant 0 : index
    %c0_9 = arith.constant 0 : index
    %7 = vector.load %arg6[%c0_8, %c0_9] : memref<17x256xf32, #tpu.memory_space<vmem>>, vector<1x4xf32>
    %8 = vector.broadcast %7 : vector<1x4xf32> to vector<25x4xf32>
    %9 = arith.addf %6, %8 : vector<25x4xf32>
    %c80 = arith.constant 80 : index
    %c0_10 = arith.constant 0 : index
    %10 = vector.load %arg1[%c80, %c0_10] : memref<496x16xf32, #tpu.memory_space<vmem>>, vector<4x16xf32>
    %cst_11 = arith.constant dense<0.000000e+00> : vector<4x25xf32>
    %11 = tpu.matmul %10, %3, %cst_11 {dimension_numbers = #tpu.dot_dimension_numbers<[1], [0], [0], [1], [0, 0, 1, 1], [], []>} : vector<4x16xf32>, vector<16x25xf32>, vector<4x25xf32> -> vector<4x25xf32>
    %c112 = arith.constant 112 : index
    %c0_12 = arith.constant 0 : index
    %12 = vector.load %arg1[%c112, %c0_12] : memref<496x16xf32, #tpu.memory_space<vmem>>, vector<16x16xf32>
    %cst_13 = arith.constant dense<0.000000e+00> : vector<25x16xf32>
    %13 = tpu.matmul %2, %12, %cst_13 {dimension_numbers = #tpu.dot_dimension_numbers<[1], [0], [0], [1], [0, 0, 1, 1], [], []>} : vector<25x16xf32>, vector<16x16xf32>, vector<25x16xf32> -> vector<25x16xf32>
    %c16 = arith.constant 16 : index
    %c0_14 = arith.constant 0 : index
    %14 = vector.load %arg2[%c16, %c0_14] : memref<84x4xf32, #tpu.memory_space<vmem>>, vector<16x4xf32>
    %cst_15 = arith.constant dense<0.000000e+00> : vector<25x4xf32>
    %15 = tpu.matmul %2, %14, %cst_15 {dimension_numbers = #tpu.dot_dimension_numbers<[1], [0], [0], [1], [0, 0, 1, 1], [], []>} : vector<25x16xf32>, vector<16x4xf32>, vector<25x4xf32> -> vector<25x4xf32>
    %c1 = arith.constant 1 : index
    %c0_16 = arith.constant 0 : index
    %16 = vector.load %arg6[%c1, %c0_16] : memref<17x256xf32, #tpu.memory_space<vmem>>, vector<1x4xf32>
    %17 = vector.broadcast %16 : vector<1x4xf32> to vector<25x4xf32>
    %18 = arith.addf %15, %17 : vector<25x4xf32>
    %c88 = arith.constant 88 : index
    %c0_17 = arith.constant 0 : index
    %19 = vector.load %arg1[%c88, %c0_17] : memref<496x16xf32, #tpu.memory_space<vmem>>, vector<4x16xf32>
    %cst_18 = arith.constant dense<0.000000e+00> : vector<4x25xf32>
    %20 = tpu.matmul %19, %3, %cst_18 {dimension_numbers = #tpu.dot_dimension_numbers<[1], [0], [0], [1], [0, 0, 1, 1], [], []>} : vector<4x16xf32>, vector<16x25xf32>, vector<4x25xf32> -> vector<4x25xf32>
    %c128 = arith.constant 128 : index
    %c0_19 = arith.constant 0 : index
    %21 = vector.load %arg1[%c128, %c0_19] : memref<496x16xf32, #tpu.memory_space<vmem>>, vector<16x16xf32>
    %cst_20 = arith.constant dense<0.000000e+00> : vector<25x16xf32>
    %22 = tpu.matmul %2, %21, %cst_20 {dimension_numbers = #tpu.dot_dimension_numbers<[1], [0], [0], [1], [0, 0, 1, 1], [], []>} : vector<25x16xf32>, vector<16x16xf32>, vector<25x16xf32> -> vector<25x16xf32>
    %c32 = arith.constant 32 : index
    %c0_21 = arith.constant 0 : index
    %23 = vector.load %arg2[%c32, %c0_21] : memref<84x4xf32, #tpu.memory_space<vmem>>, vector<16x4xf32>
    %cst_22 = arith.constant dense<0.000000e+00> : vector<25x4xf32>
    %24 = tpu.matmul %2, %23, %cst_22 {dimension_numbers = #tpu.dot_dimension_numbers<[1], [0], [0], [1], [0, 0, 1, 1], [], []>} : vector<25x16xf32>, vector<16x4xf32>, vector<25x4xf32> -> vector<25x4xf32>
    %c2 = arith.constant 2 : index
    %c0_23 = arith.constant 0 : index
    %25 = vector.load %arg6[%c2, %c0_23] : memref<17x256xf32, #tpu.memory_space<vmem>>, vector<1x4xf32>
    %26 = vector.broadcast %25 : vector<1x4xf32> to vector<25x4xf32>
    %27 = arith.addf %24, %26 : vector<25x4xf32>
    %c96 = arith.constant 96 : index
    %c0_24 = arith.constant 0 : index
    %28 = vector.load %arg1[%c96, %c0_24] : memref<496x16xf32, #tpu.memory_space<vmem>>, vector<4x16xf32>
    %cst_25 = arith.constant dense<0.000000e+00> : vector<4x25xf32>
    %29 = tpu.matmul %28, %3, %cst_25 {dimension_numbers = #tpu.dot_dimension_numbers<[1], [0], [0], [1], [0, 0, 1, 1], [], []>} : vector<4x16xf32>, vector<16x25xf32>, vector<4x25xf32> -> vector<4x25xf32>
    %c144 = arith.constant 144 : index
    %c0_26 = arith.constant 0 : index
    %30 = vector.load %arg1[%c144, %c0_26] : memref<496x16xf32, #tpu.memory_space<vmem>>, vector<16x16xf32>
    %cst_27 = arith.constant dense<0.000000e+00> : vector<25x16xf32>
    %31 = tpu.matmul %2, %30, %cst_27 {dimension_numbers = #tpu.dot_dimension_numbers<[1], [0], [0], [1], [0, 0, 1, 1], [], []>} : vector<25x16xf32>, vector<16x16xf32>, vector<25x16xf32> -> vector<25x16xf32>
    %c48 = arith.constant 48 : index
    %c0_28 = arith.constant 0 : index
    %32 = vector.load %arg2[%c48, %c0_28] : memref<84x4xf32, #tpu.memory_space<vmem>>, vector<16x4xf32>
    %cst_29 = arith.constant dense<0.000000e+00> : vector<25x4xf32>
    %33 = tpu.matmul %2, %32, %cst_29 {dimension_numbers = #tpu.dot_dimension_numbers<[1], [0], [0], [1], [0, 0, 1, 1], [], []>} : vector<25x16xf32>, vector<16x4xf32>, vector<25x4xf32> -> vector<25x4xf32>
    %c3 = arith.constant 3 : index
    %c0_30 = arith.constant 0 : index
    %34 = vector.load %arg6[%c3, %c0_30] : memref<17x256xf32, #tpu.memory_space<vmem>>, vector<1x4xf32>
    %35 = vector.broadcast %34 : vector<1x4xf32> to vector<25x4xf32>
    %36 = arith.addf %33, %35 : vector<25x4xf32>
    %c104 = arith.constant 104 : index
    %c0_31 = arith.constant 0 : index
    %37 = vector.load %arg1[%c104, %c0_31] : memref<496x16xf32, #tpu.memory_space<vmem>>, vector<4x16xf32>
    %cst_32 = arith.constant dense<0.000000e+00> : vector<4x25xf32>
    %38 = tpu.matmul %37, %3, %cst_32 {dimension_numbers = #tpu.dot_dimension_numbers<[1], [0], [0], [1], [0, 0, 1, 1], [], []>} : vector<4x16xf32>, vector<16x25xf32>, vector<4x25xf32> -> vector<4x25xf32>
    %c160 = arith.constant 160 : index
    %c0_33 = arith.constant 0 : index
    %39 = vector.load %arg1[%c160, %c0_33] : memref<496x16xf32, #tpu.memory_space<vmem>>, vector<16x16xf32>
    %cst_34 = arith.constant dense<0.000000e+00> : vector<25x16xf32>
    %40 = tpu.matmul %2, %39, %cst_34 {dimension_numbers = #tpu.dot_dimension_numbers<[1], [0], [0], [1], [0, 0, 1, 1], [], []>} : vector<25x16xf32>, vector<16x16xf32>, vector<25x16xf32> -> vector<25x16xf32>
    %cst_35 = arith.constant 0.000000e+00 : f32
    %41 = vector.broadcast %cst_35 : f32 to vector<25x16xf32>
    %cst_36 = arith.constant dense<0.000000e+00> : vector<25x25xf32>
    %42 = tpu.matmul %9, %11, %cst_36 {dimension_numbers = #tpu.dot_dimension_numbers<[1], [0], [0], [1], [0, 0, 1, 1], [], []>} : vector<25x4xf32>, vector<4x25xf32>, vector<25x25xf32> -> vector<25x25xf32>
    %cst_37 = arith.constant 5.000000e-01 : f32
    %43 = vector.broadcast %cst_37 : f32 to vector<25x25xf32>
    %44 = arith.mulf %42, %43 : vector<25x25xf32>
    %45 = arith.addf %44, %4 : vector<25x25xf32>
    %cst_38 = arith.constant dense<0xFF800000> : vector<25xf32>
    %46 = vector.multi_reduction <maximumf>, %45, %cst_38 [1] : vector<25x25xf32> to vector<25xf32>
    %47 = vector.shape_cast %46 : vector<25xf32> to vector<25x1xf32>
    %48 = vector.broadcast %47 : vector<25x1xf32> to vector<25x25xf32>
    %49 = arith.subf %45, %48 : vector<25x25xf32>
    %50 = math.exp %49 : vector<25x25xf32>
    %cst_39 = arith.constant dense<0.000000e+00> : vector<25xf32>
    %51 = vector.multi_reduction <add>, %50, %cst_39 [1] : vector<25x25xf32> to vector<25xf32>
    %52 = vector.shape_cast %51 : vector<25xf32> to vector<25x1xf32>
    %53 = tpu.reciprocal %52 : vector<25x1xf32> -> vector<25x1xf32>
    %54 = vector.broadcast %53 : vector<25x1xf32> to vector<25x25xf32>
    %55 = arith.mulf %50, %54 : vector<25x25xf32>
    %cst_40 = arith.constant dense<0.000000e+00> : vector<25x16xf32>
    %56 = tpu.matmul %55, %13, %cst_40 {dimension_numbers = #tpu.dot_dimension_numbers<[1], [0], [0], [1], [0, 0, 1, 1], [], []>} : vector<25x25xf32>, vector<25x16xf32>, vector<25x16xf32> -> vector<25x16xf32>
    %57 = arith.addf %41, %56 : vector<25x16xf32>
    %cst_41 = arith.constant dense<0.000000e+00> : vector<25x25xf32>
    %58 = tpu.matmul %18, %20, %cst_41 {dimension_numbers = #tpu.dot_dimension_numbers<[1], [0], [0], [1], [0, 0, 1, 1], [], []>} : vector<25x4xf32>, vector<4x25xf32>, vector<25x25xf32> -> vector<25x25xf32>
    %cst_42 = arith.constant 5.000000e-01 : f32
    %59 = vector.broadcast %cst_42 : f32 to vector<25x25xf32>
    %60 = arith.mulf %58, %59 : vector<25x25xf32>
    %61 = arith.addf %60, %4 : vector<25x25xf32>
    %cst_43 = arith.constant dense<0xFF800000> : vector<25xf32>
    %62 = vector.multi_reduction <maximumf>, %61, %cst_43 [1] : vector<25x25xf32> to vector<25xf32>
    %63 = vector.shape_cast %62 : vector<25xf32> to vector<25x1xf32>
    %64 = vector.broadcast %63 : vector<25x1xf32> to vector<25x25xf32>
    %65 = arith.subf %61, %64 : vector<25x25xf32>
    %66 = math.exp %65 : vector<25x25xf32>
    %cst_44 = arith.constant dense<0.000000e+00> : vector<25xf32>
    %67 = vector.multi_reduction <add>, %66, %cst_44 [1] : vector<25x25xf32> to vector<25xf32>
    %68 = vector.shape_cast %67 : vector<25xf32> to vector<25x1xf32>
    %69 = tpu.reciprocal %68 : vector<25x1xf32> -> vector<25x1xf32>
    %70 = vector.broadcast %69 : vector<25x1xf32> to vector<25x25xf32>
    %71 = arith.mulf %66, %70 : vector<25x25xf32>
    %cst_45 = arith.constant dense<0.000000e+00> : vector<25x16xf32>
    %72 = tpu.matmul %71, %22, %cst_45 {dimension_numbers = #tpu.dot_dimension_numbers<[1], [0], [0], [1], [0, 0, 1, 1], [], []>} : vector<25x25xf32>, vector<25x16xf32>, vector<25x16xf32> -> vector<25x16xf32>
    %73 = arith.addf %57, %72 : vector<25x16xf32>
    %cst_46 = arith.constant dense<0.000000e+00> : vector<25x25xf32>
    %74 = tpu.matmul %27, %29, %cst_46 {dimension_numbers = #tpu.dot_dimension_numbers<[1], [0], [0], [1], [0, 0, 1, 1], [], []>} : vector<25x4xf32>, vector<4x25xf32>, vector<25x25xf32> -> vector<25x25xf32>
    %cst_47 = arith.constant 5.000000e-01 : f32
    %75 = vector.broadcast %cst_47 : f32 to vector<25x25xf32>
    %76 = arith.mulf %74, %75 : vector<25x25xf32>
    %77 = arith.addf %76, %4 : vector<25x25xf32>
    %cst_48 = arith.constant dense<0xFF800000> : vector<25xf32>
    %78 = vector.multi_reduction <maximumf>, %77, %cst_48 [1] : vector<25x25xf32> to vector<25xf32>
    %79 = vector.shape_cast %78 : vector<25xf32> to vector<25x1xf32>
    %80 = vector.broadcast %79 : vector<25x1xf32> to vector<25x25xf32>
    %81 = arith.subf %77, %80 : vector<25x25xf32>
    %82 = math.exp %81 : vector<25x25xf32>
    %cst_49 = arith.constant dense<0.000000e+00> : vector<25xf32>
    %83 = vector.multi_reduction <add>, %82, %cst_49 [1] : vector<25x25xf32> to vector<25xf32>
    %84 = vector.shape_cast %83 : vector<25xf32> to vector<25x1xf32>
    %85 = tpu.reciprocal %84 : vector<25x1xf32> -> vector<25x1xf32>
    %86 = vector.broadcast %85 : vector<25x1xf32> to vector<25x25xf32>
    %87 = arith.mulf %82, %86 : vector<25x25xf32>
    %cst_50 = arith.constant dense<0.000000e+00> : vector<25x16xf32>
    %88 = tpu.matmul %87, %31, %cst_50 {dimension_numbers = #tpu.dot_dimension_numbers<[1], [0], [0], [1], [0, 0, 1, 1], [], []>} : vector<25x25xf32>, vector<25x16xf32>, vector<25x16xf32> -> vector<25x16xf32>
    %89 = arith.addf %73, %88 : vector<25x16xf32>
    %cst_51 = arith.constant dense<0.000000e+00> : vector<25x25xf32>
    %90 = tpu.matmul %36, %38, %cst_51 {dimension_numbers = #tpu.dot_dimension_numbers<[1], [0], [0], [1], [0, 0, 1, 1], [], []>} : vector<25x4xf32>, vector<4x25xf32>, vector<25x25xf32> -> vector<25x25xf32>
    %cst_52 = arith.constant 5.000000e-01 : f32
    %91 = vector.broadcast %cst_52 : f32 to vector<25x25xf32>
    %92 = arith.mulf %90, %91 : vector<25x25xf32>
    %93 = arith.addf %92, %4 : vector<25x25xf32>
    %cst_53 = arith.constant dense<0xFF800000> : vector<25xf32>
    %94 = vector.multi_reduction <maximumf>, %93, %cst_53 [1] : vector<25x25xf32> to vector<25xf32>
    %95 = vector.shape_cast %94 : vector<25xf32> to vector<25x1xf32>
    %96 = vector.broadcast %95 : vector<25x1xf32> to vector<25x25xf32>
    %97 = arith.subf %93, %96 : vector<25x25xf32>
    %98 = math.exp %97 : vector<25x25xf32>
    %cst_54 = arith.constant dense<0.000000e+00> : vector<25xf32>
    %99 = vector.multi_reduction <add>, %98, %cst_54 [1] : vector<25x25xf32> to vector<25xf32>
    %100 = vector.shape_cast %99 : vector<25xf32> to vector<25x1xf32>
    %101 = tpu.reciprocal %100 : vector<25x1xf32> -> vector<25x1xf32>
    %102 = vector.broadcast %101 : vector<25x1xf32> to vector<25x25xf32>
    %103 = arith.mulf %98, %102 : vector<25x25xf32>
    %cst_55 = arith.constant dense<0.000000e+00> : vector<25x16xf32>
    %104 = tpu.matmul %103, %40, %cst_55 {dimension_numbers = #tpu.dot_dimension_numbers<[1], [0], [0], [1], [0, 0, 1, 1], [], []>} : vector<25x25xf32>, vector<25x16xf32>, vector<25x16xf32> -> vector<25x16xf32>
    %105 = arith.addf %89, %104 : vector<25x16xf32>
    %c4 = arith.constant 4 : index
    %c0_56 = arith.constant 0 : index
    %106 = vector.load %arg6[%c4, %c0_56] : memref<17x256xf32, #tpu.memory_space<vmem>>, vector<1x16xf32>
    %107 = vector.broadcast %106 : vector<1x16xf32> to vector<25x16xf32>
    %108 = arith.addf %105, %107 : vector<25x16xf32>
    %109 = arith.addf %2, %108 : vector<25x16xf32>
    %c5 = arith.constant 5 : index
    %c0_57 = arith.constant 0 : index
    %110 = vector.load %arg6[%c5, %c0_57] : memref<17x256xf32, #tpu.memory_space<vmem>>, vector<1x16xf32>
    %c6 = arith.constant 6 : index
    %c0_58 = arith.constant 0 : index
    %111 = vector.load %arg6[%c6, %c0_58] : memref<17x256xf32, #tpu.memory_space<vmem>>, vector<1x16xf32>
    %cst_59 = arith.constant dense<0.000000e+00> : vector<25xf32>
    %112 = vector.multi_reduction <add>, %109, %cst_59 [1] : vector<25x16xf32> to vector<25xf32>
    %113 = vector.shape_cast %112 : vector<25xf32> to vector<25x1xf32>
    %cst_60 = arith.constant 1.600000e+01 : f32
    %114 = vector.broadcast %cst_60 : f32 to vector<25x1xf32>
    %115 = arith.divf %113, %114 : vector<25x1xf32>
    %116 = vector.broadcast %115 : vector<25x1xf32> to vector<25x16xf32>
    %117 = arith.subf %109, %116 : vector<25x16xf32>
    %118 = arith.mulf %117, %117 : vector<25x16xf32>
    %cst_61 = arith.constant dense<0.000000e+00> : vector<25xf32>
    %119 = vector.multi_reduction <add>, %118, %cst_61 [1] : vector<25x16xf32> to vector<25xf32>
    %120 = vector.shape_cast %119 : vector<25xf32> to vector<25x1xf32>
    %cst_62 = arith.constant 1.600000e+01 : f32
    %121 = vector.broadcast %cst_62 : f32 to vector<25x1xf32>
    %122 = arith.divf %120, %121 : vector<25x1xf32>
    %cst_63 = arith.constant 9.99999974E-6 : f32
    %123 = vector.broadcast %cst_63 : f32 to vector<25x1xf32>
    %124 = arith.addf %122, %123 : vector<25x1xf32>
    %125 = math.rsqrt %124 : vector<25x1xf32>
    %126 = vector.broadcast %125 : vector<25x1xf32> to vector<25x16xf32>
    %127 = arith.mulf %117, %126 : vector<25x16xf32>
    %128 = vector.broadcast %110 : vector<1x16xf32> to vector<25x16xf32>
    %129 = arith.mulf %127, %128 : vector<25x16xf32>
    %130 = vector.broadcast %111 : vector<1x16xf32> to vector<25x16xf32>
    %131 = arith.addf %129, %130 : vector<25x16xf32>
    %c0_64 = arith.constant 0 : index
    %c0_65 = arith.constant 0 : index
    %132 = vector.load %arg3[%c0_64, %c0_65] : memref<96x256xf32, #tpu.memory_space<vmem>>, vector<16x256xf32>
    %cst_66 = arith.constant dense<0.000000e+00> : vector<25x256xf32>
    %133 = tpu.matmul %131, %132, %cst_66 {dimension_numbers = #tpu.dot_dimension_numbers<[1], [0], [0], [1], [0, 0, 1, 1], [], []>} : vector<25x16xf32>, vector<16x256xf32>, vector<25x256xf32> -> vector<25x256xf32>
    %c7 = arith.constant 7 : index
    %c0_67 = arith.constant 0 : index
    %134 = vector.load %arg6[%c7, %c0_67] : memref<17x256xf32, #tpu.memory_space<vmem>>, vector<1x256xf32>
    %135 = vector.broadcast %134 : vector<1x256xf32> to vector<25x256xf32>
    %136 = arith.addf %133, %135 : vector<25x256xf32>
    %cst_68 = arith.constant 0.000000e+00 : f32
    %137 = vector.broadcast %cst_68 : f32 to vector<25x256xf32>
    %138 = arith.maximumf %136, %137 : vector<25x256xf32>
    %c176 = arith.constant 176 : index
    %c0_69 = arith.constant 0 : index
    %139 = vector.load %arg1[%c176, %c0_69] : memref<496x16xf32, #tpu.memory_space<vmem>>, vector<256x16xf32>
    %cst_70 = arith.constant dense<0.000000e+00> : vector<25x16xf32>
    %140 = tpu.matmul %138, %139, %cst_70 {dimension_numbers = #tpu.dot_dimension_numbers<[1], [0], [0], [1], [0, 0, 1, 1], [], []>} : vector<25x256xf32>, vector<256x16xf32>, vector<25x16xf32> -> vector<25x16xf32>
    %c8 = arith.constant 8 : index
    %c0_71 = arith.constant 0 : index
    %141 = vector.load %arg6[%c8, %c0_71] : memref<17x256xf32, #tpu.memory_space<vmem>>, vector<1x16xf32>
    %142 = vector.broadcast %141 : vector<1x16xf32> to vector<25x16xf32>
    %143 = arith.addf %140, %142 : vector<25x16xf32>
    %144 = arith.addf %131, %143 : vector<25x16xf32>
    %c9 = arith.constant 9 : index
    %c0_72 = arith.constant 0 : index
    %145 = vector.load %arg6[%c9, %c0_72] : memref<17x256xf32, #tpu.memory_space<vmem>>, vector<1x16xf32>
    %c10 = arith.constant 10 : index
    %c0_73 = arith.constant 0 : index
    %146 = vector.load %arg6[%c10, %c0_73] : memref<17x256xf32, #tpu.memory_space<vmem>>, vector<1x16xf32>
    %cst_74 = arith.constant dense<0.000000e+00> : vector<25xf32>
    %147 = vector.multi_reduction <add>, %144, %cst_74 [1] : vector<25x16xf32> to vector<25xf32>
    %148 = vector.shape_cast %147 : vector<25xf32> to vector<25x1xf32>
    %cst_75 = arith.constant 1.600000e+01 : f32
    %149 = vector.broadcast %cst_75 : f32 to vector<25x1xf32>
    %150 = arith.divf %148, %149 : vector<25x1xf32>
    %151 = vector.broadcast %150 : vector<25x1xf32> to vector<25x16xf32>
    %152 = arith.subf %144, %151 : vector<25x16xf32>
    %153 = arith.mulf %152, %152 : vector<25x16xf32>
    %cst_76 = arith.constant dense<0.000000e+00> : vector<25xf32>
    %154 = vector.multi_reduction <add>, %153, %cst_76 [1] : vector<25x16xf32> to vector<25xf32>
    %155 = vector.shape_cast %154 : vector<25xf32> to vector<25x1xf32>
    %cst_77 = arith.constant 1.600000e+01 : f32
    %156 = vector.broadcast %cst_77 : f32 to vector<25x1xf32>
    %157 = arith.divf %155, %156 : vector<25x1xf32>
    %cst_78 = arith.constant 9.99999974E-6 : f32
    %158 = vector.broadcast %cst_78 : f32 to vector<25x1xf32>
    %159 = arith.addf %157, %158 : vector<25x1xf32>
    %160 = math.rsqrt %159 : vector<25x1xf32>
    %161 = vector.broadcast %160 : vector<25x1xf32> to vector<25x16xf32>
    %162 = arith.mulf %152, %161 : vector<25x16xf32>
    %163 = vector.broadcast %145 : vector<1x16xf32> to vector<25x16xf32>
    %164 = arith.mulf %162, %163 : vector<25x16xf32>
    %165 = vector.broadcast %146 : vector<1x16xf32> to vector<25x16xf32>
    %166 = arith.addf %164, %165 : vector<25x16xf32>
    %cst_79 = arith.constant 0.000000e+00 : f32
    %167 = vector.broadcast %cst_79 : f32 to vector<5x256xf32>
    %168 = vector.extract_strided_slice %166 {offsets = [0, 0], sizes = [5, 16], strides = [1, 1]} : vector<25x16xf32> to vector<5x16xf32>
    %c16_80 = arith.constant 16 : index
    %c0_81 = arith.constant 0 : index
    %169 = vector.load %arg3[%c16_80, %c0_81] : memref<96x256xf32, #tpu.memory_space<vmem>>, vector<16x256xf32>
    %cst_82 = arith.constant dense<0.000000e+00> : vector<5x256xf32>
    %170 = tpu.matmul %168, %169, %cst_82 {dimension_numbers = #tpu.dot_dimension_numbers<[1], [0], [0], [1], [0, 0, 1, 1], [], []>} : vector<5x16xf32>, vector<16x256xf32>, vector<5x256xf32> -> vector<5x256xf32>
    %171 = arith.addf %167, %170 : vector<5x256xf32>
    %172 = vector.extract_strided_slice %166 {offsets = [5, 0], sizes = [5, 16], strides = [1, 1]} : vector<25x16xf32> to vector<5x16xf32>
    %c32_83 = arith.constant 32 : index
    %c0_84 = arith.constant 0 : index
    %173 = vector.load %arg3[%c32_83, %c0_84] : memref<96x256xf32, #tpu.memory_space<vmem>>, vector<16x256xf32>
    %cst_85 = arith.constant dense<0.000000e+00> : vector<5x256xf32>
    %174 = tpu.matmul %172, %173, %cst_85 {dimension_numbers = #tpu.dot_dimension_numbers<[1], [0], [0], [1], [0, 0, 1, 1], [], []>} : vector<5x16xf32>, vector<16x256xf32>, vector<5x256xf32> -> vector<5x256xf32>
    %175 = arith.addf %171, %174 : vector<5x256xf32>
    %176 = vector.extract_strided_slice %166 {offsets = [10, 0], sizes = [5, 16], strides = [1, 1]} : vector<25x16xf32> to vector<5x16xf32>
    %c48_86 = arith.constant 48 : index
    %c0_87 = arith.constant 0 : index
    %177 = vector.load %arg3[%c48_86, %c0_87] : memref<96x256xf32, #tpu.memory_space<vmem>>, vector<16x256xf32>
    %cst_88 = arith.constant dense<0.000000e+00> : vector<5x256xf32>
    %178 = tpu.matmul %176, %177, %cst_88 {dimension_numbers = #tpu.dot_dimension_numbers<[1], [0], [0], [1], [0, 0, 1, 1], [], []>} : vector<5x16xf32>, vector<16x256xf32>, vector<5x256xf32> -> vector<5x256xf32>
    %179 = arith.addf %175, %178 : vector<5x256xf32>
    %180 = vector.extract_strided_slice %166 {offsets = [15, 0], sizes = [5, 16], strides = [1, 1]} : vector<25x16xf32> to vector<5x16xf32>
    %c64 = arith.constant 64 : index
    %c0_89 = arith.constant 0 : index
    %181 = vector.load %arg3[%c64, %c0_89] : memref<96x256xf32, #tpu.memory_space<vmem>>, vector<16x256xf32>
    %cst_90 = arith.constant dense<0.000000e+00> : vector<5x256xf32>
    %182 = tpu.matmul %180, %181, %cst_90 {dimension_numbers = #tpu.dot_dimension_numbers<[1], [0], [0], [1], [0, 0, 1, 1], [], []>} : vector<5x16xf32>, vector<16x256xf32>, vector<5x256xf32> -> vector<5x256xf32>
    %183 = arith.addf %179, %182 : vector<5x256xf32>
    %184 = vector.extract_strided_slice %166 {offsets = [20, 0], sizes = [5, 16], strides = [1, 1]} : vector<25x16xf32> to vector<5x16xf32>
    %c80_91 = arith.constant 80 : index
    %c0_92 = arith.constant 0 : index
    %185 = vector.load %arg3[%c80_91, %c0_92] : memref<96x256xf32, #tpu.memory_space<vmem>>, vector<16x256xf32>
    %cst_93 = arith.constant dense<0.000000e+00> : vector<5x256xf32>
    %186 = tpu.matmul %184, %185, %cst_93 {dimension_numbers = #tpu.dot_dimension_numbers<[1], [0], [0], [1], [0, 0, 1, 1], [], []>} : vector<5x16xf32>, vector<16x256xf32>, vector<5x256xf32> -> vector<5x256xf32>
    %187 = arith.addf %183, %186 : vector<5x256xf32>
    %c11 = arith.constant 11 : index
    %c0_94 = arith.constant 0 : index
    %188 = vector.load %arg6[%c11, %c0_94] : memref<17x256xf32, #tpu.memory_space<vmem>>, vector<1x256xf32>
    %189 = vector.broadcast %188 : vector<1x256xf32> to vector<5x256xf32>
    %190 = arith.addf %187, %189 : vector<5x256xf32>
    %cst_95 = arith.constant 0.000000e+00 : f32
    %191 = vector.broadcast %cst_95 : f32 to vector<5x256xf32>
    %192 = arith.maximumf %190, %191 : vector<5x256xf32>
    %c0_96 = arith.constant 0 : index
    %c0_97 = arith.constant 0 : index
    %193 = vector.load %arg4[%c0_96, %c0_97] : memref<256x128xf32, #tpu.memory_space<vmem>>, vector<256x128xf32>
    %cst_98 = arith.constant dense<0.000000e+00> : vector<5x128xf32>
    %194 = tpu.matmul %192, %193, %cst_98 {dimension_numbers = #tpu.dot_dimension_numbers<[1], [0], [0], [1], [0, 0, 1, 1], [], []>} : vector<5x256xf32>, vector<256x128xf32>, vector<5x128xf32> -> vector<5x128xf32>
    %c12 = arith.constant 12 : index
    %c0_99 = arith.constant 0 : index
    %195 = vector.load %arg6[%c12, %c0_99] : memref<17x256xf32, #tpu.memory_space<vmem>>, vector<1x128xf32>
    %196 = vector.broadcast %195 : vector<1x128xf32> to vector<5x128xf32>
    %197 = arith.addf %194, %196 : vector<5x128xf32>
    %cst_100 = arith.constant 0.000000e+00 : f32
    %198 = vector.broadcast %cst_100 : f32 to vector<5x128xf32>
    %199 = arith.maximumf %197, %198 : vector<5x128xf32>
    %c0_101 = arith.constant 0 : index
    %c0_102 = arith.constant 0 : index
    %200 = vector.load %arg5[%c0_101, %c0_102] : memref<128x64xf32, #tpu.memory_space<vmem>>, vector<128x64xf32>
    %cst_103 = arith.constant dense<0.000000e+00> : vector<5x64xf32>
    %201 = tpu.matmul %199, %200, %cst_103 {dimension_numbers = #tpu.dot_dimension_numbers<[1], [0], [0], [1], [0, 0, 1, 1], [], []>} : vector<5x128xf32>, vector<128x64xf32>, vector<5x64xf32> -> vector<5x64xf32>
    %c13 = arith.constant 13 : index
    %c0_104 = arith.constant 0 : index
    %202 = vector.load %arg6[%c13, %c0_104] : memref<17x256xf32, #tpu.memory_space<vmem>>, vector<1x64xf32>
    %203 = vector.broadcast %202 : vector<1x64xf32> to vector<5x64xf32>
    %204 = arith.addf %201, %203 : vector<5x64xf32>
    %cst_105 = arith.constant 0.000000e+00 : f32
    %205 = vector.broadcast %cst_105 : f32 to vector<5x64xf32>
    %206 = arith.maximumf %204, %205 : vector<5x64xf32>
    %c432 = arith.constant 432 : index
    %c0_106 = arith.constant 0 : index
    %207 = vector.load %arg1[%c432, %c0_106] : memref<496x16xf32, #tpu.memory_space<vmem>>, vector<64x16xf32>
    %cst_107 = arith.constant dense<0.000000e+00> : vector<5x16xf32>
    %208 = tpu.matmul %206, %207, %cst_107 {dimension_numbers = #tpu.dot_dimension_numbers<[1], [0], [0], [1], [0, 0, 1, 1], [], []>} : vector<5x64xf32>, vector<64x16xf32>, vector<5x16xf32> -> vector<5x16xf32>
    %c14 = arith.constant 14 : index
    %c0_108 = arith.constant 0 : index
    %209 = vector.load %arg6[%c14, %c0_108] : memref<17x256xf32, #tpu.memory_space<vmem>>, vector<1x16xf32>
    %210 = vector.broadcast %209 : vector<1x16xf32> to vector<5x16xf32>
    %211 = arith.addf %208, %210 : vector<5x16xf32>
    %cst_109 = arith.constant 0.000000e+00 : f32
    %212 = vector.broadcast %cst_109 : f32 to vector<5x16xf32>
    %213 = arith.maximumf %211, %212 : vector<5x16xf32>
    %c64_110 = arith.constant 64 : index
    %c0_111 = arith.constant 0 : index
    %214 = vector.load %arg2[%c64_110, %c0_111] : memref<84x4xf32, #tpu.memory_space<vmem>>, vector<16x4xf32>
    %cst_112 = arith.constant dense<0.000000e+00> : vector<5x4xf32>
    %215 = tpu.matmul %213, %214, %cst_112 {dimension_numbers = #tpu.dot_dimension_numbers<[1], [0], [0], [1], [0, 0, 1, 1], [], []>} : vector<5x16xf32>, vector<16x4xf32>, vector<5x4xf32> -> vector<5x4xf32>
    %c15 = arith.constant 15 : index
    %c0_113 = arith.constant 0 : index
    %216 = vector.load %arg6[%c15, %c0_113] : memref<17x256xf32, #tpu.memory_space<vmem>>, vector<1x4xf32>
    %217 = vector.broadcast %216 : vector<1x4xf32> to vector<5x4xf32>
    %218 = arith.addf %215, %217 : vector<5x4xf32>
    %cst_114 = arith.constant 0.000000e+00 : f32
    %219 = vector.broadcast %cst_114 : f32 to vector<5x4xf32>
    %220 = arith.maximumf %218, %219 : vector<5x4xf32>
    %c80_115 = arith.constant 80 : index
    %c0_116 = arith.constant 0 : index
    %221 = vector.load %arg2[%c80_115, %c0_116] : memref<84x4xf32, #tpu.memory_space<vmem>>, vector<4x4xf32>
    %cst_117 = arith.constant dense<0.000000e+00> : vector<5x4xf32>
    %222 = tpu.matmul %220, %221, %cst_117 {dimension_numbers = #tpu.dot_dimension_numbers<[1], [0], [0], [1], [0, 0, 1, 1], [], []>} : vector<5x4xf32>, vector<4x4xf32>, vector<5x4xf32> -> vector<5x4xf32>
    %223 = vector.extract_strided_slice %222 {offsets = [0, 0], sizes = [5, 1], strides = [1, 1]} : vector<5x4xf32> to vector<5x1xf32>
    %c16_118 = arith.constant 16 : index
    %c0_119 = arith.constant 0 : index
    %224 = vector.load %arg6[%c16_118, %c0_119] : memref<17x256xf32, #tpu.memory_space<vmem>>, vector<1x1xf32>
    %225 = vector.broadcast %224 : vector<1x1xf32> to vector<5x1xf32>
    %226 = arith.addf %223, %225 : vector<5x1xf32>
    %c0_120 = arith.constant 0 : index
    %c0_121 = arith.constant 0 : index
    %227 = vector.load %arg8[%c0_120, %c0_121] : memref<5x1xf32, #tpu.memory_space<vmem>>, vector<5x1xf32>
    tpu.vector_store %arg8[%c0_120, %c0_121], %226 {strides = array<i32>} : memref<5x1xf32, #tpu.memory_space<vmem>>, vector<5x1xf32>,
    return
  }
}

</mosaic_0001>

<bundles_post_ra>
// kernel: tile.9
= control target key start
LH: loop header
LB: loop body
LE: loop exit
PB: predicated region body
PF: predicated region fallthrough
CT: control target
= control target key end

     0   :  { %vm5_vm0 = vcmask 1044484   ;;  %s62_s14 = smov 20   ;;  %vm7_vm1 = vcmask 39936   ;;  %s63_s19 = smov 10   ;;  %vm17_vm2 = vcmask 203936   ;;  %vm27_vm3 = vcmask 162936   ;;  %s126_s0 = inlined_call_operand.vmem [shape: f32[5,5,5], index: 0, kind: input, shape index: {}]   ;;  %s127_s1 = inlined_call_operand.vmem [shape: f32[25,5], index: 1, kind: output, shape index: {}]  }
   0x1   :  { %v50_v0 = vld [vmem:[%s126_s0 + $0x4] ss:$8 sm:$0xf]   ;;  %v54_v3 = vld [vmem:[%s126_s0 + $0x2] ss:$8 sm:$0xf]  }
   0x2   :  { %v51_v1 = vld [vmem:[%s126_s0 + $0x20] sm:$0x10]   ;;  %v55_v4 = vld [vmem:[%s126_s0 + $0x1e] sm:$0x10]   ;;  %v53_v7 = vld [vmem:[%s126_s0 + $0x1f] sm:$0x10]  }
   0x3   :  { %v14_v2 = vsel %vm5_vm0, %v51_v1, %v50_v0  ;;  %v34_v5 = vsel %vm5_vm0, %v55_v4, %v54_v3  ;;  %v52_v6 = vld [vmem:[%s126_s0 + $0x3] ss:$8 sm:$0xf]   ;;  %v56_v9 = vld [vmem:[%s126_s0 + $0x1] ss:$8 sm:$0xf]  }
   0x4   :  { %15 = vrot.lane.b32.xlu0 %v14_v2, %s62_s14  ;;  %35 = vrot.lane.b32.xlu1 %v34_v5, %s63_s19  ;;  %v24_v8 = vsel %vm5_vm0, %v53_v7, %v52_v6  ;;  %v57_v10 = vld [vmem:[%s126_s0 + $0x1d] sm:$0x10]   ;;  %v2_v12 = vld [vmem:[%s126_s0] ss:$8 sm:$0xf]   ;;  %s65_s30 = smov 5  }
   0x5   :  { %v44_v11 = vsel %vm5_vm0, %v57_v10, %v56_v9  ;;  %v49_v13 = vld [vmem:[%s126_s0 + $0x1c] sm:$0x10]   ;;  %s64_s0 = smov 15   ;;  %vm37_vm4 = vcmask 121936   ;;  %vm47_vm5 = vcmask 80936  }
   0x6   :  { %v6_v14 = vsel %vm5_vm0, %v49_v13, %v2_v12 }
   0x7   :  { %8 = vst.msk [vmem:[%s127_s1] sm:$0x1f] %vm7_vm1, %v6_v14  }
   0x8   :  { %25 = vrot.lane.b32.xlu0 %v24_v8, %s64_s0  ;;  %45 = vrot.lane.b32.xlu1 %v44_v11, %s65_s30 }
  0x76   :  { %v16_v15 = vpop.permute.xlu0 %15   ;;  %v36_v16 = vpop.permute.xlu1 %35  }
  0x77   :  { %18 = vst.msk [vmem:[%s127_s1] sm:$0x1f] %vm17_vm2, %v16_v15  }
  0x7a   :  { %v26_v17 = vpop.permute.xlu0 %25   ;;  %v46_v18 = vpop.permute.xlu1 %45  }
  0x7b   :  { %28 = vst.msk [vmem:[%s127_s1] sm:$0x1f] %vm27_vm3, %v26_v17  }
  0x7c   :  { %38 = vst.msk [vmem:[%s127_s1] sm:$0x1f] %vm37_vm4, %v36_v16  }
  0x7d   :  { %48 = vst.msk [vmem:[%s127_s1] sm:$0x1f] %vm47_vm5, %v46_v18  }

// kernel: full_encoder_forward.1
= control target key start
LH: loop header
LB: loop body
LE: loop exit
PB: predicated region body
PF: predicated region fallthrough
CT: control target
= control target key end

     0   :  { %vm43_vm0 = vcmask 654336   ;;  %v4433_v25 = vmov 0.0|0.0   ;;  %vm148_vm1 = vcmask 130048   ;;  %vm4434_vm3 = vmmov 0   ;;  %s5503_s1 = inlined_call_operand.vmem [shape: f32[496,16], index: 1, kind: input, shape index: {}]   ;;  %s5504_s0 = inlined_call_operand.vmem [shape: f32[25,80], index: 0, kind: input, shape index: {}]   ;;  %s5505_s2 = inlined_call_operand.vmem [shape: f32[84,4], index: 2, kind: input, shape index: {}]   ;;  %s5506_s6 = inlined_call_operand.vmem [shape: f32[17,256], index: 6, kind: input, shape index: {}]   ;;  %s5507_s7 = inlined_call_operand.vmem [shape: f32[25,25], index: 7, kind: input, shape index: {}]   ;;  %s5508_s3 = inlined_call_operand.vmem [shape: f32[96,256], index: 3, kind: input, shape index: {}]   ;;  %s5509_s4 = inlined_call_operand.vmem [shape: f32[256,128], index: 4, kind: input, shape index: {}]   ;;  %s5510_s5 = inlined_call_operand.vmem [shape: f32[128,64], index: 5, kind: input, shape index: {}]   ;;  %s5511_s8 = inlined_call_operand.vmem [shape: f32[5,1], index: 8, kind: output, shape index: {}]  }
   0x1   :  { %v33_v0 = vld [vmem:[%s5503_s1] sm:$0xff]  ;;  %v34_v1 = vld [vmem:[%s5503_s1 + $0x8] sm:$0xff]  ;;  %v35_v2 = vld [vmem:[%s5503_s1 + $0x10] sm:$0xff]  ;;  %v4435_v43 = vmov 0.0   ;;  %vm1154_vm4 = vcmask 31744   ;;  %vm1167_vm5 = vcmask 1043456  }
   0x2   :  { %v4078_v3 = vpack.c.bf16 %v34_v1, %v33_v0  ;;  %v36_v4 = vld [vmem:[%s5503_s1 + $0x18] sm:$0xff]  ;;  %v37_v6 = vld [vmem:[%s5503_s1 + $0x20] sm:$0xff]  ;;  %v38_v7 = vld [vmem:[%s5503_s1 + $0x28] sm:$0xff]  ;;  %vm1474_vm6 = vcmask 1040384   ;;  %vm4436_vm7 = vmmov 1   ;;  %vm1264_vm9 = vcmask 203776  }
   0x3   :  { %v4082_v5 = vpack.c.bf16 %v36_v4, %v35_v2  ;;  %v29_v8 = vld [vmem:[%s5504_s0] sm:$0xff]  ;;  %v4086_v10 = vpack.c.bf16 %v38_v7, %v37_v6  ;;  %v146_v11 = vld [vmem:[%s5505_s2 + $0x8] sm:$0xff]  ;;  %v39_v12 = vld [vmem:[%s5503_s1 + $0x30] sm:$0xff]  ;;  %vm1274_vm10 = vcmask 196608   ;;  %vm2195_vm11 = vcmask 122880  }
   0x4   :  { %4079 = vmatprep.subr.bf16.mxu0 %v4078_v3  ;;  %3794 = vmatprep.mubr.msk.f32.mxu0 %vm43_vm0, %v29_v8  ;;  %v145_v9 = vld [vmem:[%s5505_s2] sm:$0xff]  ;;  %v40_v13 = vld [vmem:[%s5503_s1 + $0x38] sm:$0xff]  ;;  %v42_v17 = vld [vmem:[%s5503_s1 + $0x48] sm:$0xff]  ;;  %vm2568_vm12 = vcmask 1042432   ;;  %vm3182_vm13 = vcmask 523264   ;;  %vm3413_vm14 = vcmask 4096  }
   0x5   :  { %4081 = vmatpush3.bf16.msra.mxu0 %v4078_v3  ;;  %v4098_v14 = vpack.c.bf16 %v146_v11, %v145_v9  ;;  %v4090_v15 = vpack.c.bf16 %v40_v13, %v39_v12  ;;  %v41_v16 = vld [vmem:[%s5503_s1 + $0x40] sm:$0xff]  ;;  %v407_v19 = vld [vmem:[%s5505_s2 + $0x10] sm:$0xff]  ;;  %v408_v20 = vld [vmem:[%s5505_s2 + $0x18] sm:$0xff] }
   0x6   :  { %4083 = vmatprep.subr.bf16.mxu0 %v4082_v5  ;;  %v4094_v18 = vpack.c.bf16 %v42_v17, %v41_v16  ;;  %v4114_v21 = vpack.c.bf16 %v408_v20, %v407_v19  ;;  %v30_v22 = vld [vmem:[%s5504_s0 + $0x8] sm:$0xff]  ;;  %v31_v23 = vld [vmem:[%s5504_s0 + $0x10] sm:$0xff]  ;;  %v32_v24 = vld [vmem:[%s5504_s0 + $0x18] sm:$0x1] }
   0x7   :  { %4099 = vmatprep.subr.bf16.mxu1 %v4098_v14  ;;  %v656_v26 = vld [vmem:[%s5505_s2 + $0x20] sm:$0xff]  ;;  %v657_v27 = vld [vmem:[%s5505_s2 + $0x28] sm:$0xff]  ;;  %v818_v29 = vld [vmem:[%s5503_s1 + $0x90] sm:$0xff] }
   0x8   :  { %4101 = vmatpush3.bf16.msra.mxu1 %v4098_v14  ;;  %v4130_v28 = vpack.c.bf16 %v657_v27, %v656_v26  ;;  %v819_v30 = vld [vmem:[%s5503_s1 + $0x98] sm:$0xff]  ;;  %vm4559_vm2 = vmpackc.low %vm148_vm1, %vm148_vm1  ;;  %v320_v39 = vld [vmem:[%s5503_s1 + $0x70] sm:$0xff] }
   0x9   :  { %4085 = vmatpush3.bf16.msra.mxu0 %v4082_v5  ;;  %4102 = vmatprep.subr.bf16.mxu1 %v4433_v25  ;;  %v4142_v34 = vpack.c.bf16 %v819_v30, %v818_v29  ;;  %v321_v40 = vld [vmem:[%s5503_s1 + $0x78] sm:$0xff]  ;;  %v905_v41 = vld [vmem:[%s5505_s2 + $0x30] sm:$0xff]  ;;  %v1067_v46 = vld [vmem:[%s5503_s1 + $0xa0] sm:$0xff] }
   0xa   :  { %4087 = vmatprep.subr.bf16.mxu0 %v4086_v10  ;;  %v906_v42 = vld [vmem:[%s5505_s2 + $0x38] sm:$0xff]  ;;  %v4110_v44 = vpack.c.bf16 %v321_v40, %v320_v39  ;;  %v1068_v47 = vld [vmem:[%s5503_s1 + $0xa8] sm:$0xff]  ;;  %v246_v48 = vld [vmem:[%s5503_s1 + $0x50] sm:$0xf] }
   0xb   :  { %v4146_v45 = vpack.c.bf16 %v906_v42, %v905_v41  ;;  %v4158_v49 = vpack.c.bf16 %v1068_v47, %v1067_v46  ;;  %v569_v50 = vld [vmem:[%s5503_s1 + $0x80] sm:$0xff]  ;;  %v570_v51 = vld [vmem:[%s5503_s1 + $0x88] sm:$0xff]  ;;  %v495_v53 = vld [vmem:[%s5503_s1 + $0x58] sm:$0xf] }
   0xc   :  { %v4126_v52 = vpack.c.bf16 %v570_v51, %v569_v50  ;;  %v744_v54 = vld [vmem:[%s5503_s1 + $0x60] sm:$0xf]  ;;  %v993_v55 = vld [vmem:[%s5503_s1 + $0x68] sm:$0xf]  ;;  %vm4759_vm8 = vmpackc.low %vm1474_vm6, %vm4436_vm7 }
   0xd   :  { %4089 = vmatpush3.bf16.msra.mxu0 %v4086_v10  ;;  %v147_v56 = vld [vmem:[%s5506_s6] ss:$0 sm:$0xff]  ;;  %v409_v57 = vld [vmem:[%s5506_s6 + $0x1] ss:$0 sm:$0xff] }
   0xe   :  { %4091 = vmatprep.subr.bf16.mxu0 %v4090_v15 }
  0x11   :  { %4093 = vmatpush3.bf16.msra.mxu0 %v4090_v15 }
  0x12   :  { %4095 = vmatprep.subr.bf16.mxu0 %v4094_v18 }
  0x15   :  { %4097 = vmatpush3.bf16.msra.mxu0 %v4094_v18 }
  0x16   :  { %4115 = vmatprep.subr.bf16.mxu0 %v4114_v21 }
  0x18   :  { %3795 = vmatmul.mubr.msk.f32.vlgmr.msra.gmra.mrb[0].mxu0 %vm43_vm0, %v30_v22 }
  0x19   :  { %3797 = vmatprep.mubr.msk.f32.mxu0 %vm43_vm0, %v31_v23  ;;  %4117 = vmatpush3.bf16.msra.mxu0 %v4114_v21 }
  0x1a   :  { %4131 = vmatprep.subr.bf16.mxu0 %v4130_v28 }
  0x1c   :  { %3798 = vmatmul.mubr.msk.f32.gmra.mrb[2].mxu0 %vm43_vm0, %v32_v24 }
  0xeb   :  { %v4553_v31 = vpop.f32.mrb[0].mxu0 }
  0xec   :  { %v4555_v32 = vpop.f32.mrb[1].mxu0 }
  0xed   :  { %3804 = vmatprep.mubr.msk.f32.mxu1 %vm148_vm1, %v4555_v32  ;;  %3835 = vmatprep.mubr.msk.f32.mxu0 %vm148_vm1, %v4555_v32  ;;  %v4569_v35 = vpack.c.bf16 %v4553_v31, %v4555_v32 }
  0xee   :  { %3805 = vmatmul.mubr.msk.f32.vlgmr.msra.gmra.mrb[0].mxu1 %vm148_vm1, %v4553_v31  ;;  %3836 = vmatmul.mubr.msk.f32.vlgmr.msra.gmra.mrb[4].mxu0 %vm148_vm1, %v4553_v31 }
  0xef   :  { %v4575_v36 = vpop.f32.mrb[2].mxu0  ;;  %4105 = vmatpush3.bf16.xpose.msk.msra.mxu1 %vm4559_vm2, %v4569_v35  ;;  %4133 = vmatpush3.bf16.msra.mxu0 %v4130_v28 }
  0xf0   :  { %v4580_v37 = vpop.f32.mrb[3].mxu0  ;;  %4106 = vmatprep.subr.bf16.mxu1 %v4433_v25  ;;  %4143 = vmatprep.subr.bf16.mxu0 %v4142_v34 }
  0xf1   :  { %3838 = vmatprep.mubr.msk.f32.mxu0 %vm148_vm1, %v4580_v37  ;;  %3807 = vmatprep.mubr.msk.f32.mxu1 %vm148_vm1, %v4580_v37  ;;  %v4589_v38 = vpack.c.bf16 %v4575_v36, %v4580_v37 }
  0xf2   :  { %3839 = vmatmul.mubr.msk.f32.gmra.mrb[6].mxu0 %vm148_vm1, %v4575_v36  ;;  %3808 = vmatmul.mubr.msk.f32.gmra.mrb[2].mxu1 %vm148_vm1, %v4575_v36 }
  0xf3   :  { %3866 = vmatprep.mubr.msk.f32.mxu0 %vm148_vm1, %v4555_v32  ;;  %3818 = vmatprep.mubr.msk.f32.mxu1 %vm4434_vm3, %v4435_v43 }
  0xf6   :  { %3867 = vmatmul.mubr.msk.f32.vlgmr.msra.gmra.mrb[8].mxu0 %vm148_vm1, %v4553_v31 }
  0xf7   :  { %4109 = vmatpush3.bf16.xpose.msk.msra.mxu1 %vm4559_vm2, %v4589_v38  ;;  %3869 = vmatprep.mubr.msk.f32.mxu0 %vm148_vm1, %v4580_v37 }
  0xf8   :  { %4145 = vmatpush3.bf16.msra.mxu0 %v4142_v34  ;;  %4111 = vmatprep.subr.bf16.mxu1 %v4110_v44 }
  0xf9   :  { %4147 = vmatprep.subr.bf16.mxu0 %v4146_v45 }
  0xfa   :  { %3870 = vmatmul.mubr.msk.f32.gmra.mrb[10].mxu0 %vm148_vm1, %v4575_v36 }
  0xfb   :  { %3887 = vmatprep.mubr.msk.f32.mxu0 %vm148_vm1, %v4555_v32 }
  0xfe   :  { %3819 = vmatmul.mubr.msk.f32.vlgmr.msra.gmra.mrb[4].mxu1 %vm148_vm1, %v246_v48  ;;  %3888 = vmatmul.mubr.msk.f32.vlgmr.msra.gmra.mrb[12].mxu0 %vm148_vm1, %v4553_v31 }
  0xff   :  { %4113 = vmatpush3.bf16.msra.mxu1 %v4110_v44  ;;  %3825 = vmatprep.mubr.msk.f32.mxu1 %vm148_vm1, %v4555_v32 }
 0x100   :  { %3890 = vmatprep.mubr.msk.f32.mxu0 %vm148_vm1, %v4580_v37  ;;  %4149 = vmatpush3.bf16.msra.mxu0 %v4146_v45  ;;  %v658_v45 = vld [vmem:[%s5506_s6 + $0x2] ss:$0 sm:$0xff] }
 0x101   :  { %4118 = vmatprep.subr.bf16.mxu1 %v4433_v25  ;;  %4159 = vmatprep.subr.bf16.mxu0 %v4158_v49 }
 0x102   :  { %3826 = vmatmul.mubr.msk.f32.vlgmr.msra.gmra.mrb[6].mxu1 %vm148_vm1, %v4553_v31  ;;  %3891 = vmatmul.mubr.msk.f32.gmra.mrb[14].mxu0 %vm148_vm1, %v4575_v36 }
 0x103   :  { %3828 = vmatprep.mubr.msk.f32.mxu1 %vm148_vm1, %v4580_v37  ;;  %3897 = vmatprep.mubr.msk.f32.mxu0 %vm148_vm1, %v4555_v32 }
 0x106   :  { %3829 = vmatmul.mubr.msk.f32.gmra.mrb[8].mxu1 %vm148_vm1, %v4575_v36  ;;  %3898 = vmatmul.mubr.msk.f32.vlgmr.msra.gmra.mrb[16].mxu0 %vm148_vm1, %v4553_v31 }
 0x107   :  { %3900 = vmatprep.mubr.msk.f32.mxu0 %vm148_vm1, %v4580_v37  ;;  %4161 = vmatpush3.bf16.msra.mxu0 %v4158_v49 }
 0x108   :  { %4121 = vmatpush3.bf16.xpose.msk.msra.mxu1 %vm4559_vm2, %v4569_v35  ;;  %3849 = vmatprep.mubr.msk.f32.mxu1 %vm4434_vm3, %v4435_v43 }
 0x109   :  { %4122 = vmatprep.subr.bf16.mxu1 %v4433_v25 }
 0x10a   :  { %3901 = vmatmul.mubr.msk.f32.gmra.mrb[18].mxu0 %vm148_vm1, %v4575_v36 }
 0x10b   :  { %3918 = vmatprep.mubr.msk.f32.mxu0 %vm148_vm1, %v4555_v32 }
 0x10e   :  { %3919 = vmatmul.mubr.msk.f32.vlgmr.msra.gmra.mrb[20].mxu0 %vm148_vm1, %v4553_v31 }
 0x10f   :  { %3921 = vmatprep.mubr.msk.f32.mxu0 %vm148_vm1, %v4580_v37 }
 0x110   :  { %4125 = vmatpush3.bf16.xpose.msk.msra.mxu1 %vm4559_vm2, %v4589_v38 }
 0x111   :  { %4127 = vmatprep.subr.bf16.mxu1 %v4126_v52 }
 0x112   :  { %3922 = vmatmul.mubr.msk.f32.gmra.mrb[22].mxu0 %vm148_vm1, %v4575_v36 }
 0x117   :  { %3850 = vmatmul.mubr.msk.f32.vlgmr.msra.gmra.mrb[10].mxu1 %vm148_vm1, %v495_v53 }
 0x118   :  { %4129 = vmatpush3.bf16.msra.mxu1 %v4126_v52  ;;  %3856 = vmatprep.mubr.msk.f32.mxu1 %vm148_vm1, %v4555_v32 }
 0x119   :  { %4134 = vmatprep.subr.bf16.mxu1 %v4433_v25 }
 0x11b   :  { %3857 = vmatmul.mubr.msk.f32.vlgmr.msra.gmra.mrb[12].mxu1 %vm148_vm1, %v4553_v31 }
 0x11c   :  { %3859 = vmatprep.mubr.msk.f32.mxu1 %vm148_vm1, %v4580_v37 }
 0x11f   :  { %3860 = vmatmul.mubr.msk.f32.gmra.mrb[14].mxu1 %vm148_vm1, %v4575_v36 }
 0x120   :  { %3880 = vmatprep.mubr.msk.f32.mxu1 %vm4434_vm3, %v4435_v43 }
 0x121   :  { %4137 = vmatpush3.bf16.xpose.msk.msra.mxu1 %vm4559_vm2, %v4569_v35 }
 0x122   :  { %4138 = vmatprep.subr.bf16.mxu1 %v4433_v25 }
 0x129   :  { %4141 = vmatpush3.bf16.xpose.msk.msra.mxu1 %vm4559_vm2, %v4589_v38 }
 0x12a   :  { %4150 = vmatprep.subr.bf16.mxu1 %v4433_v25 }
 0x130   :  { %3881 = vmatmul.mubr.msk.f32.vlgmr.msra.gmra.mrb[16].mxu1 %vm148_vm1, %v744_v54 }
 0x131   :  { %4153 = vmatpush3.bf16.xpose.msk.msra.mxu1 %vm4559_vm2, %v4569_v35  ;;  %3911 = vmatprep.mubr.msk.f32.mxu1 %vm4434_vm3, %v4435_v43 }
 0x132   :  { %4154 = vmatprep.subr.bf16.mxu1 %v4433_v25 }
 0x139   :  { %4157 = vmatpush3.bf16.xpose.msk.msra.mxu1 %vm4559_vm2, %v4589_v38 }
 0x140   :  { %3912 = vmatmul.mubr.msk.f32.vlgmr.msra.gmra.mrb[18].mxu1 %vm148_vm1, %v993_v55 }
 0x1c1   :  { %v3806_v58 = vpop.f32.mrb[0].mxu1  ;;  %v3837_v59 = vpop.f32.mrb[4].mxu0 }
 0x1c2   :  { %v227_v60 = vpop.f32.mrb[1].mxu1  ;;  %v476_v61 = vpop.f32.mrb[5].mxu0  ;;  %v233_v10 = vadd.f32 %v3806_v58, %v147_v56  ;;  %v482_v41 = vadd.f32 %v3837_v59, %v409_v57  ;;  %v907_v59 = vld [vmem:[%s5506_s6 + $0x3] ss:$0 sm:$0xff] }
 0x1c3   :  { %v228_v62 = vadd.f32 %v227_v60, %v147_v56  ;;  %v477_v63 = vadd.f32 %v476_v61, %v409_v57 }
 0x1c5   :  { %3926 = vmatprep.mubr.msk.f32.mxu0 %vm1154_vm4, %v228_v62  ;;  %3934 = vmatprep.mubr.msk.f32.mxu1 %vm1154_vm4, %v477_v63  ;;  %v3809_v0 = vpop.f32.mrb[2].mxu1  ;;  %v3840_v1 = vpop.f32.mrb[6].mxu0 }
 0x1c6   :  { %v237_v2 = vpop.f32.mrb[3].mxu1  ;;  %v486_v3 = vpop.f32.mrb[7].mxu0  ;;  %v243_v17 = vadd.f32 %v3809_v0, %v147_v56  ;;  %v492_v47 = vadd.f32 %v3840_v1, %v409_v57 }
 0x1c7   :  { %v238_v13 = vadd.f32 %v237_v2, %v147_v56  ;;  %v487_v44 = vadd.f32 %v486_v3, %v409_v57 }
 0x1c9   :  { %v4726_v4 = vpop.f32.mrb[8].mxu0 }
 0x1ca   :  { %v725_v5 = vpop.f32.mrb[9].mxu0  ;;  %v731_v56 = vadd.f32 %v4726_v4, %v658_v45 }
 0x1cb   :  { %v726_v49 = vadd.f32 %v725_v5, %v658_v45 }
 0x1cd   :  { %v4728_v6 = vpop.f32.mrb[10].mxu0 }
 0x1ce   :  { %v4730_v7 = vpop.f32.mrb[11].mxu0  ;;  %v741_v60 = vadd.f32 %v4728_v6, %v658_v45 }
 0x1cf   :  { %v736_v58 = vadd.f32 %v4730_v7, %v658_v45 }
 0x1d1   :  { %v316_v8 = vpop.f32.mrb[4].mxu1  ;;  %v3889_v9 = vpop.f32.mrb[12].mxu0 }
 0x1d2   :  { %v3820_v11 = vpop.f32.mrb[5].mxu1  ;;  %v886_v12 = vpop.f32.mrb[13].mxu0  ;;  %3924 = vmatprep.subr.msk.mxu0 %vm1167_vm5, %v316_v8 }
 0x1d3   :  { %v4733_v14 = vpack.c.bf16 %v3889_v9, %v886_v12  ;;  %3925 = vmatpush3.msk.msra.mxu0 %vm1167_vm5, %v316_v8  ;;  %v4789_v11 = vld [vmem:[%s5507_s7] sm:$0xff] }
 0x1d4   :  { %3927 = vmatmul.mubr.msk.f32.vlgmr.msra.gmra.mrb[24].mxu0 %vm1154_vm4, %v233_v10 }
 0x1d5   :  { %v3827_v15 = vpop.f32.mrb[6].mxu1  ;;  %v3892_v16 = vpop.f32.mrb[14].mxu0  ;;  %3929 = vmatprep.mubr.msk.f32.mxu0 %vm1154_vm4, %v238_v13 }
 0x1d6   :  { %v388_v18 = vpop.f32.mrb[7].mxu1  ;;  %v896_v19 = vpop.f32.mrb[15].mxu0 }
 0x1d7   :  { %v4738_v20 = vpack.c.bf16 %v3827_v15, %v388_v18  ;;  %v4740_v21 = vpack.c.bf16 %v3892_v16, %v896_v19 }
 0x1d8   :  { %3930 = vmatmul.mubr.msk.f32.gmra.mrb[26].mxu0 %vm1154_vm4, %v243_v17  ;;  %v142_v17 = vld [vmem:[%s5507_s7 + $0x8] sm:$0xff] }
 0x1d9   :  { %v3830_v22 = vpop.f32.mrb[8].mxu1  ;;  %v3899_v23 = vpop.f32.mrb[16].mxu0 }
 0x1da   :  { %v398_v24 = vpop.f32.mrb[9].mxu1  ;;  %v974_v26 = vpop.f32.mrb[17].mxu0  ;;  %v980_v63 = vadd.f32 %v3899_v23, %v907_v59 }
 0x1db   :  { %v4743_v27 = vpack.c.bf16 %v3830_v22, %v398_v24  ;;  %v975_v61 = vadd.f32 %v974_v26, %v907_v59  ;;  %v143_v24 = vld [vmem:[%s5507_s7 + $0x10] sm:$0xff] }
 0x1dd   :  { %v3902_v28 = vpop.f32.mrb[18].mxu0 }
 0x1de   :  { %v984_v29 = vpop.f32.mrb[19].mxu0  ;;  %v990_v2 = vadd.f32 %v3902_v28, %v907_v59 }
 0x1df   :  { %v985_v1 = vadd.f32 %v984_v29, %v907_v59 }
 0x1e1   :  { %v3920_v30 = vpop.f32.mrb[20].mxu0 }
 0x1e2   :  { %v1135_v33 = vpop.f32.mrb[21].mxu0 }
 0x1e3   :  { %v4745_v34 = vpack.c.bf16 %v3920_v30, %v1135_v33  ;;  %v144_v30 = vld [vmem:[%s5507_s7 + $0x18] sm:$0x1] }
 0x1e5   :  { %v3923_v35 = vpop.f32.mrb[22].mxu0 }
 0x1e6   :  { %v1145_v38 = vpop.f32.mrb[23].mxu0 }
 0x1e7   :  { %v4747_v39 = vpack.c.bf16 %v3923_v35, %v1145_v38 }
 0x1ea   :  { %v565_v40 = vpop.f32.mrb[10].mxu1 }
 0x1eb   :  { %v3851_v42 = vpop.f32.mrb[11].mxu1  ;;  %3932 = vmatprep.subr.msk.mxu1 %vm1167_vm5, %v565_v40 }
 0x1ec   :  { %3933 = vmatpush3.msk.msra.mxu1 %vm1167_vm5, %v565_v40 }
 0x1ed   :  { %3935 = vmatmul.mubr.msk.f32.vlgmr.msra.gmra.mrb[20].mxu1 %vm1154_vm4, %v482_v41 }
 0x1ee   :  { %v3858_v46 = vpop.f32.mrb[12].mxu1  ;;  %3937 = vmatprep.mubr.msk.f32.mxu1 %vm1154_vm4, %v487_v44 }
 0x1ef   :  { %v637_v48 = vpop.f32.mrb[13].mxu1 }
 0x1f0   :  { %v4162_v50 = vpack.c.bf16 %v3858_v46, %v637_v48 }
 0x1f1   :  { %3938 = vmatmul.mubr.msk.f32.gmra.mrb[22].mxu1 %vm1154_vm4, %v492_v47 }
 0x1f2   :  { %v3861_v51 = vpop.f32.mrb[14].mxu1  ;;  %4163 = vmatprep.subr.bf16.mxu0 %v4162_v50  ;;  %3970 = vmatprep.mubr.msk.f32.mxu1 %vm1154_vm4, %v726_v49 }
 0x1f3   :  { %v647_v52 = vpop.f32.mrb[15].mxu1  ;;  %4165 = vmatpush3.bf16.msra.mxu0 %v4162_v50 }
 0x1f4   :  { %v4166_v54 = vpack.c.bf16 %v3861_v51, %v647_v52 }
 0x1f6   :  { %4168 = vmatprep.subr.msk.bf16.mxu0 %vm4759_vm8, %v4166_v54 }
 0x1f7   :  { %4171 = vmatpush3.bf16.msk.msra.mxu0 %vm4759_vm8, %v4166_v54 }
 0x1f8   :  { %4173 = vmatprep.subr.bf16.mxu0 %v4738_v20 }
 0x203   :  { %v814_v55 = vpop.f32.mrb[16].mxu1 }
 0x204   :  { %v3882_v57 = vpop.f32.mrb[17].mxu1  ;;  %3968 = vmatprep.subr.msk.mxu1 %vm1167_vm5, %v814_v55 }
 0x205   :  { %3969 = vmatpush3.msk.msra.mxu1 %vm1167_vm5, %v814_v55 }
 0x206   :  { %3971 = vmatmul.mubr.msk.f32.vlgmr.msra.gmra.mrb[24].mxu1 %vm1154_vm4, %v731_v56 }
 0x207   :  { %3973 = vmatprep.mubr.msk.f32.mxu1 %vm1154_vm4, %v736_v58 }
 0x20a   :  { %3974 = vmatmul.mubr.msk.f32.gmra.mrb[26].mxu1 %vm1154_vm4, %v741_v60 }
 0x20b   :  { %3992 = vmatprep.mubr.msk.f32.mxu1 %vm1154_vm4, %v975_v61 }
 0x213   :  { %v1063_v62 = vpop.f32.mrb[18].mxu1 }
 0x214   :  { %v3913_v0 = vpop.f32.mrb[19].mxu1  ;;  %3990 = vmatprep.subr.msk.mxu1 %vm1167_vm5, %v1063_v62 }
 0x215   :  { %3991 = vmatpush3.msk.msra.mxu1 %vm1167_vm5, %v1063_v62 }
 0x216   :  { %3993 = vmatmul.mubr.msk.f32.vlgmr.msra.gmra.mrb[28].mxu1 %vm1154_vm4, %v980_v63 }
 0x217   :  { %3995 = vmatprep.mubr.msk.f32.mxu1 %vm1154_vm4, %v985_v1 }
 0x21a   :  { %3996 = vmatmul.mubr.msk.f32.gmra.mrb[30].mxu1 %vm1154_vm4, %v990_v2 }
 0x21b   :  { %2341 = vmatprep.mubr.f32.mxu1 %v4435_v43 }
 0x2a7   :  { %v3928_v3 = vpop.f32.mrb[24].mxu0 }
 0x2a8   :  { %v1237_v4 = vpop.f32.mrb[25].mxu0  ;;  %v1257_v28 = vmul.f32 0.5, %v3928_v3 }
 0x2a9   :  { %v1256_v15 = vmul.f32 0.5, %v1237_v4 }
 0x2aa   :  { %v4818_v41 = vadd.f32 %v1257_v28, %v142_v17 }
 0x2ab   :  { %v3931_v5 = vpop.f32.mrb[26].mxu0  ;;  %v4807_v29 = vadd.f32 %v1256_v15, %v4789_v11 }
 0x2ac   :  { %v1247_v6 = vpop.f32.mrb[27].mxu0  ;;  %v1259_v42 = vmul.f32 0.5, %v3931_v5  ;;  %v1268_v47 = vsel %vm1264_vm9, %v4818_v41, -inf }
 0x2ad   :  { %v1258_v33 = vmul.f32 0.5, %v1247_v6  ;;  %v1265_v44 = vsel %vm1264_vm9, %v4807_v29, -inf }
 0x2ae   :  { %v4830_v49 = vadd.f32 %v1259_v42, %v144_v30 }
 0x2af   :  { %v4824_v46 = vadd.f32 %v1258_v33, %v143_v24 }
 0x2b0   :  { %v1275_v50 = vsel %vm1274_vm10, %v4830_v49, -inf }
 0x2b1   :  { %v1271_v48 = vsel %vm1264_vm9, %v4824_v46, -inf }
 0x2c0   :  { %v3936_v7 = vpop.f32.mrb[20].mxu1 }
 0x2c1   :  { %v1391_v8 = vpop.f32.mrb[21].mxu1  ;;  %v1411_v9 = vmul.f32 0.5, %v3936_v7 }
 0x2c2   :  { %v1410_v10 = vmul.f32 0.5, %v1391_v8 }
 0x2c3   :  { %v4799_v23 = vadd.f32 %v1411_v9, %v142_v17 }
 0x2c4   :  { %v3939_v12 = vpop.f32.mrb[22].mxu1  ;;  %v4792_v13 = vadd.f32 %v1410_v10, %v4789_v11 }
 0x2c5   :  { %v1401_v16 = vpop.f32.mrb[23].mxu1  ;;  %v1413_v18 = vmul.f32 0.5, %v3939_v12  ;;  %v1421_v35 = vsel %vm1264_vm9, %v4799_v23, -inf }
 0x2c6   :  { %v1412_v19 = vmul.f32 0.5, %v1401_v16  ;;  %v1418_v22 = vsel %vm1264_vm9, %v4792_v13, -inf }
 0x2c7   :  { %1419 = vmax.xlane.f32.xlu0 %v1418_v22  ;;  %v4816_v40 = vadd.f32 %v1413_v18, %v144_v30 }
 0x2c8   :  { %v4804_v26 = vadd.f32 %v1412_v19, %v143_v24 }
 0x2c9   :  { %v1427_v45 = vsel %vm1274_vm10, %v4816_v40, -inf }
 0x2ca   :  { %v1424_v38 = vsel %vm1264_vm9, %v4804_v26, -inf }
 0x2cb   :  { %1422 = vmax.xlane.f32.xlu0 %v1421_v35  ;;  %1425 = vmax.xlane.f32.xlu1 %v1424_v38 }
 0x2cf   :  { %1266 = vmax.xlane.f32.xlu0 %v1265_v44  ;;  %1428 = vmax.xlane.f32.xlu1 %v1427_v45 }
 0x2d3   :  { %1269 = vmax.xlane.f32.xlu1 %v1268_v47  ;;  %1272 = vmax.xlane.f32.xlu0 %v1271_v48 }
 0x2d7   :  { %1276 = vmax.xlane.f32.xlu1 %v1275_v50 }
 0x2d9   :  { %v3972_v51 = vpop.f32.mrb[24].mxu1 }
 0x2da   :  { %v1764_v52 = vmul.f32 0.5, %v3972_v51  ;;  %v1744_v54 = vpop.f32.mrb[25].mxu1 }
 0x2db   :  { %v1763_v55 = vmul.f32 0.5, %v1744_v54 }
 0x2dc   :  { %v4834_v56 = vadd.f32 %v1764_v52, %v142_v17 }
 0x2dd   :  { %v3975_v57 = vpop.f32.mrb[26].mxu1  ;;  %v4837_v58 = vadd.f32 %v1763_v55, %v4789_v11 }
 0x2de   :  { %v1766_v59 = vmul.f32 0.5, %v3975_v57  ;;  %v1754_v60 = vpop.f32.mrb[27].mxu1  ;;  %v1774_v61 = vsel %vm1264_vm9, %v4834_v56, -inf }
 0x2df   :  { %v1765_v62 = vmul.f32 0.5, %v1754_v60  ;;  %1775 = vmax.xlane.f32.xlu1 %v1774_v61  ;;  %v1771_v63 = vsel %vm1264_vm9, %v4837_v58, -inf }
 0x2e0   :  { %1772 = vmax.xlane.f32.xlu0 %v1771_v63  ;;  %v4843_v0 = vadd.f32 %v1766_v59, %v144_v30 }
 0x2e1   :  { %v4845_v1 = vadd.f32 %v1765_v62, %v143_v24 }
 0x2e2   :  { %v1780_v2 = vsel %vm1274_vm10, %v4843_v0, -inf }
 0x2e3   :  { %1781 = vmax.xlane.f32.xlu1 %v1780_v2  ;;  %v1777_v3 = vsel %vm1264_vm9, %v4845_v1, -inf }
 0x2e4   :  { %1778 = vmax.xlane.f32.xlu0 %v1777_v3 }
 0x2e9   :  { %v3994_v4 = vpop.f32.mrb[28].mxu1 }
 0x2ea   :  { %v2020_v5 = vmul.f32 0.5, %v3994_v4  ;;  %v2000_v6 = vpop.f32.mrb[29].mxu1 }
 0x2eb   :  { %v2019_v7 = vmul.f32 0.5, %v2000_v6 }
 0x2ec   :  { %v4851_v8 = vadd.f32 %v2020_v5, %v142_v17 }
 0x2ed   :  { %v3997_v9 = vpop.f32.mrb[30].mxu1  ;;  %v4854_v10 = vadd.f32 %v2019_v7, %v4789_v11 }
 0x2ee   :  { %v2022_v12 = vmul.f32 0.5, %v3997_v9  ;;  %v2010_v15 = vpop.f32.mrb[31].mxu1  ;;  %v2030_v16 = vsel %vm1264_vm9, %v4851_v8, -inf }
 0x2ef   :  { %v2021_v18 = vmul.f32 0.5, %v2010_v15  ;;  %2031 = vmax.xlane.f32.xlu1 %v2030_v16  ;;  %v2027_v19 = vsel %vm1264_vm9, %v4854_v10, -inf }
 0x2f0   :  { %2028 = vmax.xlane.f32.xlu0 %v2027_v19  ;;  %v4860_v22 = vadd.f32 %v2022_v12, %v144_v30 }
 0x2f1   :  { %v4862_v28 = vadd.f32 %v2021_v18, %v143_v24 }
 0x2f2   :  { %v2036_v17 = vsel %vm1274_vm10, %v4860_v22, -inf }
 0x2f3   :  { %2037 = vmax.xlane.f32.xlu1 %v2036_v17  ;;  %v2033_v11 = vsel %vm1264_vm9, %v4862_v28, -inf }
 0x2f4   :  { %2034 = vmax.xlane.f32.xlu0 %v2033_v11 }
 0x354   :  { %v1420_v33 = vpop.xlane.xlu0 %1419 }
 0x355   :  { %v1430_v35 = vsub.f32 %v4792_v13, %v1420_v33 }
 0x357   :  { %v1434_v38 = vmul.f32 1.442695, %v1430_v35 }
 0x358   :  { %v1423_v42 = vpop.xlane.xlu0 %1422  ;;  %v1426_v44 = vpop.xlane.xlu1 %1425 }
 0x359   :  { %4353 = vpow2.f32 %v1434_v38  ;;  %v1431_v30 = vsub.f32 %v4799_v23, %v1423_v42  ;;  %v1432_v24 = vsub.f32 %v4804_v26, %v1426_v44 }
 0x35b   :  { %v1436_v45 = vmul.f32 1.442695, %v1431_v30  ;;  %v1438_v47 = vmul.f32 1.442695, %v1432_v24 }
 0x35c   :  { %v1267_v48 = vpop.xlane.xlu0 %1266  ;;  %v1429_v50 = vpop.xlane.xlu1 %1428 }
 0x35d   :  { %4355 = vpow2.f32 %v1436_v45  ;;  %v1278_v51 = vsub.f32 %v4807_v29, %v1267_v48  ;;  %v1433_v52 = vsub.f32 %v4816_v40, %v1429_v50 }
 0x35e   :  { %4357 = vpow2.f32 %v1438_v47 }
 0x35f   :  { %v1282_v54 = vmul.f32 1.442695, %v1278_v51  ;;  %v1440_v13 = vmul.f32 1.442695, %v1433_v52 }
 0x360   :  { %v1270_v55 = vpop.xlane.xlu1 %1269  ;;  %v1273_v57 = vpop.xlane.xlu0 %1272 }
 0x361   :  { %4359 = vpow2.f32 %v1282_v54  ;;  %v1279_v59 = vsub.f32 %v4818_v41, %v1270_v55  ;;  %v1280_v23 = vsub.f32 %v4824_v46, %v1273_v57 }
 0x362   :  { %4361 = vpow2.f32 %v1440_v13 }
 0x363   :  { %v4875_v26 = vpop.eup %4353  ;;  %v1284_v60 = vmul.f32 1.442695, %v1279_v59  ;;  %v1286_v61 = vmul.f32 1.442695, %v1280_v23 }
 0x364   :  { %v1277_v62 = vpop.xlane.xlu1 %1276  ;;  %v1442_v29 = vsel %vm1264_vm9, %v4875_v26, 0.0 }
 0x365   :  { %4363 = vpow2.f32 %v1284_v60  ;;  %v1281_v40 = vsub.f32 %v4830_v49, %v1277_v62  ;;  %1443 = vadd.xlane.f32.xlu0 %v1442_v29 }
 0x366   :  { %4365 = vpow2.f32 %v1286_v61 }
 0x367   :  { %v4880_v63 = vpop.eup %4355  ;;  %v1288_v2 = vmul.f32 1.442695, %v1281_v40 }
 0x368   :  { %v4882_v41 = vpop.eup %4357  ;;  %v1445_v46 = vsel %vm1264_vm9, %v4880_v63, 0.0 }
 0x369   :  { %4367 = vpow2.f32 %v1288_v2  ;;  %1446 = vadd.xlane.f32.xlu1 %v1445_v46  ;;  %v1448_v3 = vsel %vm1264_vm9, %v4882_v41, 0.0 }
 0x36a   :  { %1449 = vadd.xlane.f32.xlu0 %v1448_v3 }
 0x36b   :  { %v4888_v4 = vpop.eup %4359 }
 0x36c   :  { %v4890_v5 = vpop.eup %4361  ;;  %v1776_v49 = vpop.xlane.xlu1 %1775  ;;  %v1290_v6 = vsel %vm1264_vm9, %v4888_v4, 0.0 }
 0x36d   :  { %v1784_v7 = vsub.f32 %v4834_v56, %v1776_v49  ;;  %v1451_v9 = vsel %vm1274_vm10, %v4890_v5, 0.0  ;;  %v1773_v12 = vpop.xlane.xlu0 %1772 }
 0x36e   :  { %1452 = vadd.xlane.f32.xlu1 %v1451_v9  ;;  %1291 = vadd.xlane.f32.xlu0 %v1290_v6  ;;  %v1783_v15 = vsub.f32 %v4837_v58, %v1773_v12 }
 0x36f   :  { %v4898_v16 = vpop.eup %4363  ;;  %v1789_v18 = vmul.f32 1.442695, %v1784_v7 }
 0x370   :  { %v4900_v19 = vpop.eup %4365  ;;  %v1787_v17 = vmul.f32 1.442695, %v1783_v15  ;;  %v1782_v11 = vpop.xlane.xlu1 %1781  ;;  %v1293_v33 = vsel %vm1264_vm9, %v4898_v16, 0.0 }
 0x371   :  { %4369 = vpow2.f32 %v1789_v18  ;;  %v1786_v56 = vsub.f32 %v4843_v0, %v1782_v11  ;;  %v1296_v35 = vsel %vm1264_vm9, %v4900_v19, 0.0  ;;  %v1779_v38 = vpop.xlane.xlu0 %1778 }
 0x372   :  { %4371 = vpow2.f32 %v1787_v17  ;;  %1294 = vadd.xlane.f32.xlu1 %v1293_v33  ;;  %1297 = vadd.xlane.f32.xlu0 %v1296_v35  ;;  %v1785_v58 = vsub.f32 %v4845_v1, %v1779_v38 }
 0x373   :  { %v4908_v42 = vpop.eup %4367  ;;  %v1793_v44 = vmul.f32 1.442695, %v1786_v56 }
 0x374   :  { %v1791_v30 = vmul.f32 1.442695, %v1785_v58  ;;  %v1299_v24 = vsel %vm1274_vm10, %v4908_v42, 0.0 }
 0x375   :  { %4373 = vpow2.f32 %v1793_v44 }
 0x376   :  { %4375 = vpow2.f32 %v1791_v30  ;;  %1300 = vadd.xlane.f32.xlu1 %v1299_v24 }
 0x37b   :  { %v4912_v0 = vpop.eup %4369 }
 0x37c   :  { %v4914_v45 = vpop.eup %4371  ;;  %v2032_v47 = vpop.xlane.xlu1 %2031  ;;  %v1798_v48 = vsel %vm1264_vm9, %v4912_v0, 0.0 }
 0x37d   :  { %v2040_v1 = vsub.f32 %v4851_v8, %v2032_v47  ;;  %1799 = vadd.xlane.f32.xlu1 %v1798_v48  ;;  %v2029_v50 = vpop.xlane.xlu0 %2028  ;;  %v1795_v51 = vsel %vm1264_vm9, %v4914_v45, 0.0 }
 0x37e   :  { %v2039_v52 = vsub.f32 %v4854_v10, %v2029_v50  ;;  %1796 = vadd.xlane.f32.xlu0 %v1795_v51 }
 0x37f   :  { %v4922_v54 = vpop.eup %4373  ;;  %v2045_v13 = vmul.f32 1.442695, %v2040_v1 }
 0x380   :  { %v4924_v55 = vpop.eup %4375  ;;  %v2043_v57 = vmul.f32 1.442695, %v2039_v52  ;;  %v2038_v59 = vpop.xlane.xlu1 %2037  ;;  %v1804_v23 = vsel %vm1274_vm10, %v4922_v54, 0.0 }
 0x381   :  { %4377 = vpow2.f32 %v2045_v13  ;;  %v2042_v8 = vsub.f32 %v4860_v22, %v2038_v59  ;;  %1805 = vadd.xlane.f32.xlu1 %v1804_v23  ;;  %v2035_v60 = vpop.xlane.xlu0 %2034  ;;  %v1801_v61 = vsel %vm1264_vm9, %v4924_v55, 0.0 }
 0x382   :  { %4379 = vpow2.f32 %v2043_v57  ;;  %v2041_v10 = vsub.f32 %v4862_v28, %v2035_v60  ;;  %1802 = vadd.xlane.f32.xlu0 %v1801_v61 }
 0x383   :  { %v2049_v62 = vmul.f32 1.442695, %v2042_v8 }
 0x384   :  { %v2047_v29 = vmul.f32 1.442695, %v2041_v10 }
 0x385   :  { %4381 = vpow2.f32 %v2049_v62 }
 0x386   :  { %4383 = vpow2.f32 %v2047_v29 }
 0x38b   :  { %v4932_v40 = vpop.eup %4377 }
 0x38c   :  { %v4934_v2 = vpop.eup %4379  ;;  %v2054_v22 = vsel %vm1264_vm9, %v4932_v40, 0.0 }
 0x38d   :  { %2055 = vadd.xlane.f32.xlu1 %v2054_v22  ;;  %v2051_v46 = vsel %vm1264_vm9, %v4934_v2, 0.0 }
 0x38e   :  { %2052 = vadd.xlane.f32.xlu0 %v2051_v46 }
 0x38f   :  { %v4940_v3 = vpop.eup %4381 }
 0x390   :  { %v4942_v28 = vpop.eup %4383  ;;  %v2060_v49 = vsel %vm1274_vm10, %v4940_v3, 0.0 }
 0x391   :  { %2061 = vadd.xlane.f32.xlu1 %v2060_v49  ;;  %v2057_v6 = vsel %vm1264_vm9, %v4942_v28, 0.0 }
 0x392   :  { %2058 = vadd.xlane.f32.xlu0 %v2057_v6 }
 0x3f2   :  { %v1444_v7 = vpop.xlane.xlu0 %1443 }
 0x3f3   :  { %4385 = vrcp.f32 %v1444_v7 }
 0x3f6   :  { %v1447_v9 = vpop.xlane.xlu1 %1446 }
 0x3f7   :  { %4387 = vrcp.f32 %v1447_v9  ;;  %v1450_v12 = vpop.xlane.xlu0 %1449 }
 0x3f8   :  { %4389 = vrcp.f32 %v1450_v12 }
 0x3fb   :  { %v1453_v15 = vpop.xlane.xlu1 %1452  ;;  %v1292_v18 = vpop.xlane.xlu0 %1291 }
 0x3fc   :  { %4391 = vrcp.f32 %v1453_v15 }
 0x3fd   :  { %v4386_v17 = vpop.eup %4385  ;;  %4393 = vrcp.f32 %v1292_v18 }
 0x3fe   :  { %v1458_v11 = vmul.f32 %v4386_v17, %v4875_v26 }
 0x3ff   :  { %v1295_v33 = vpop.xlane.xlu1 %1294  ;;  %v1298_v56 = vpop.xlane.xlu0 %1297 }
 0x400   :  { %4395 = vrcp.f32 %v1295_v33  ;;  %3948 = vmatprep.mubr.msk.f32.mxu0 %vm1264_vm9, %v1458_v11 }
 0x401   :  { %v4388_v35 = vpop.eup %4387  ;;  %4397 = vrcp.f32 %v1298_v56 }
 0x402   :  { %v4390_v38 = vpop.eup %4389  ;;  %v1459_v58 = vmul.f32 %v4388_v35, %v4880_v63 }
 0x403   :  { %v1301_v44 = vpop.xlane.xlu1 %1300  ;;  %v1460_v30 = vmul.f32 %v4390_v38, %v4882_v41 }
 0x404   :  { %4399 = vrcp.f32 %v1301_v44  ;;  %3949 = vmatmul.mubr.msk.f32.vlgmr.msra.gmra.mrb[28].mxu0 %vm1264_vm9, %v1459_v58 }
 0x405   :  { %4175 = vmatpush3.bf16.msra.mxu0 %v4738_v20  ;;  %3951 = vmatprep.mubr.msk.f32.mxu0 %vm1264_vm9, %v1460_v30 }
 0x406   :  { %v4392_v26 = vpop.eup %4391  ;;  %4178 = vmatprep.subr.msk.bf16.mxu0 %vm4759_vm8, %v4743_v27 }
 0x407   :  { %v4394_v24 = vpop.eup %4393  ;;  %v1461_v47 = vmul.f32 %v4392_v26, %v4890_v5 }
 0x408   :  { %v1306_v63 = vmul.f32 %v4394_v24, %v4888_v4 }
 0x409   :  { %3952 = vmatmul.mubr.msk.f32.gmra.mrb[30].mxu0 %vm1264_vm9, %v1461_v47 }
 0x40a   :  { %v4396_v41 = vpop.eup %4395  ;;  %4181 = vmatpush3.bf16.msk.msra.mxu0 %vm4759_vm8, %v4743_v27  ;;  %3962 = vmatprep.mubr.msk.f32.mxu0 %vm1264_vm9, %v1306_v63  ;;  %v1800_v20 = vpop.xlane.xlu1 %1799 }
 0x40b   :  { %v4398_v48 = vpop.eup %4397  ;;  %v1307_v1 = vmul.f32 %v4396_v41, %v4898_v16  ;;  %4183 = vmatprep.subr.bf16.mxu0 %v4733_v14  ;;  %4401 = vrcp.f32 %v1800_v20  ;;  %v1797_v50 = vpop.xlane.xlu0 %1796 }
 0x40c   :  { %4403 = vrcp.f32 %v1797_v50  ;;  %v1308_v4 = vmul.f32 %v4398_v48, %v4900_v19 }
 0x40d   :  { %3963 = vmatmul.mubr.msk.f32.vlgmr.msra.gmra.mrb[28].mxu0 %vm1264_vm9, %v1307_v1 }
 0x40e   :  { %v4400_v5 = vpop.eup %4399  ;;  %4185 = vmatpush3.bf16.msra.mxu0 %v4733_v14  ;;  %3965 = vmatprep.mubr.msk.f32.mxu0 %vm1264_vm9, %v1308_v4  ;;  %v1806_v27 = vpop.xlane.xlu1 %1805  ;;  %v2249_v4 = vld [vmem:[%s5508_s3 + $0x8] sm:$0xff] }
 0x40f   :  { %4188 = vmatprep.subr.msk.bf16.mxu0 %vm4759_vm8, %v4740_v21  ;;  %4405 = vrcp.f32 %v1806_v27  ;;  %v1803_v16 = vpop.xlane.xlu0 %1802  ;;  %v1309_v51 = vmul.f32 %v4400_v5, %v4908_v42  ;;  %v2251_v5 = vld [vmem:[%s5508_s3 + $0x18] sm:$0xff] }
 0x410   :  { %4407 = vrcp.f32 %v1803_v16  ;;  %v4202_v27 = vpack.c.bf16 %v2251_v5, %v2249_v4  ;;  %v2248_v16 = vld [vmem:[%s5508_s3] sm:$0xff]  ;;  %v2382_v5 = vld [vmem:[%s5503_s1 + $0xf0] sm:$0xff] }
 0x411   :  { %3966 = vmatmul.mubr.msk.f32.gmra.mrb[30].mxu0 %vm1264_vm9, %v1309_v51  ;;  %v2250_v51 = vld [vmem:[%s5508_s3 + $0x10] sm:$0xff] }
 0x412   :  { %4191 = vmatpush3.bf16.msk.msra.mxu0 %vm4759_vm8, %v4740_v21  ;;  %4203 = vmatprep.subr.bf16.mxu1 %v4202_v27  ;;  %v2383_v27 = vld [vmem:[%s5503_s1 + $0xf8] sm:$0xff] }
 0x413   :  { %4193 = vmatprep.subr.bf16.mxu0 %v4745_v34 }
 0x415   :  { %v4402_v14 = vpop.eup %4401 }
 0x416   :  { %v4404_v19 = vpop.eup %4403  ;;  %v1812_v13 = vmul.f32 %v4402_v14, %v4912_v0  ;;  %v4204_v14 = vpack.c.bf16 %v2250_v51, %v2248_v16  ;;  %v2400_v16 = vld [vmem:[%s5503_s1 + $0x180] sm:$0xff]  ;;  %v2401_v51 = vld [vmem:[%s5503_s1 + $0x188] sm:$0xff] }
 0x417   :  { %v1811_v52 = vmul.f32 %v4404_v19, %v4914_v45  ;;  %v2390_v19 = vld [vmem:[%s5503_s1 + $0x130] sm:$0xff] }
 0x418   :  { %4205 = vmatpush1.bf16.msra.mxu1 %v4204_v14  ;;  %v4224_v14 = vpack.c.bf16 %v2383_v27, %v2382_v5 }
 0x419   :  { %v4406_v57 = vpop.eup %4405  ;;  %3984 = vmatprep.mubr.msk.f32.mxu0 %vm1264_vm9, %v1811_v52  ;;  %v2391_v52 = vld [vmem:[%s5503_s1 + $0x138] sm:$0xff] }
 0x41a   :  { %v4408_v59 = vpop.eup %4407  ;;  %v2056_v42 = vpop.xlane.xlu1 %2055  ;;  %3985 = vmatmul.mubr.msk.f32.vlgmr.msra.gmra.mrb[28].mxu0 %vm1264_vm9, %v1812_v13  ;;  %v1814_v0 = vmul.f32 %v4406_v57, %v4922_v54  ;;  %v4206_v13 = vpack.c.bf16 %v2391_v52, %v2390_v19  ;;  %v4226_v19 = vpack.c.bf16 %v2401_v51, %v2400_v16  ;;  %v2384_v52 = vld [vmem:[%s5503_s1 + $0x100] sm:$0xff] }
 0x41b   :  { %4409 = vrcp.f32 %v2056_v42  ;;  %4195 = vmatpush3.bf16.msra.mxu0 %v4745_v34  ;;  %v2053_v23 = vpop.xlane.xlu0 %2052  ;;  %v1813_v21 = vmul.f32 %v4408_v59, %v4924_v55 }
 0x41c   :  { %4198 = vmatprep.subr.msk.bf16.mxu0 %vm4759_vm8, %v4747_v39  ;;  %4411 = vrcp.f32 %v2053_v23  ;;  %4207 = vmatprep.subr.bf16.mxu1 %v4206_v13  ;;  %v2385_v13 = vld [vmem:[%s5503_s1 + $0x108] sm:$0xff] }
 0x41d   :  { %3987 = vmatprep.mubr.msk.f32.mxu0 %vm1264_vm9, %v1813_v21 }
 0x41e   :  { %v2062_v45 = vpop.xlane.xlu1 %2061  ;;  %3988 = vmatmul.mubr.msk.f32.gmra.mrb[30].mxu0 %vm1264_vm9, %v1814_v0 }
 0x41f   :  { %4413 = vrcp.f32 %v2062_v45  ;;  %4201 = vmatpush3.bf16.msk.msra.mxu0 %vm4759_vm8, %v4747_v39  ;;  %v2059_v34 = vpop.xlane.xlu0 %2058  ;;  %v2175_v39 = vld [vmem:[%s5506_s6 + $0x4] ss:$0 sm:$0xff] }
 0x420   :  { %4415 = vrcp.f32 %v2059_v34 }
 0x425   :  { %v4410_v55 = vpop.eup %4409 }
 0x426   :  { %v4412_v8 = vpop.eup %4411  ;;  %v2068_v61 = vmul.f32 %v4410_v55, %v4932_v40 }
 0x427   :  { %v2067_v60 = vmul.f32 %v4412_v8, %v4934_v2 }
 0x429   :  { %v4414_v10 = vpop.eup %4413  ;;  %4006 = vmatprep.mubr.msk.f32.mxu0 %vm1264_vm9, %v2067_v60 }
 0x42a   :  { %v4416_v54 = vpop.eup %4415  ;;  %4007 = vmatmul.mubr.msk.f32.vlgmr.msra.gmra.mrb[28].mxu0 %vm1264_vm9, %v2068_v61  ;;  %v2070_v29 = vmul.f32 %v4414_v10, %v4940_v3 }
 0x42b   :  { %v2069_v62 = vmul.f32 %v4416_v54, %v4942_v28 }
 0x42d   :  { %4009 = vmatprep.mubr.msk.f32.mxu0 %vm1264_vm9, %v2069_v62  ;;  %v2184_v62 = vld [vmem:[%s5506_s6 + $0x5] ss:$0 sm:$0xff] }
 0x42e   :  { %4010 = vmatmul.mubr.msk.f32.gmra.mrb[30].mxu0 %vm1264_vm9, %v2070_v29 }
 0x42f   :  { %2638 = vmatprep.mubr.f32.mxu0 %v4435_v43 }
 0x4fd   :  { %v4008_v53 = vpop.f32.mrb[28].mxu0 }
 0x4fe   :  { %v2177_v40 = vadd.f32 %v4008_v53, %v2175_v39  ;;  %v2152_v2 = vpop.f32.mrb[29].mxu0  ;;  %v2374_v53 = vld [vmem:[%s5503_s1 + $0xb0] sm:$0xff] }
 0x4ff   :  { %v2176_v22 = vadd.f32 %v2175_v39, %v2152_v2  ;;  %v2185_v2 = vld [vmem:[%s5506_s6 + $0x6] ss:$0 sm:$0xff] }
 0x500   :  { %v2181_v46 = vadd.f32 %v4553_v31, %v2177_v40  ;;  %v2375_v40 = vld [vmem:[%s5503_s1 + $0xb8] sm:$0xff] }
 0x501   :  { %v4011_v49 = vpop.f32.mrb[30].mxu0  ;;  %v2180_v28 = vadd.f32 %v2176_v22, %v4555_v32  ;;  %v2392_v22 = vld [vmem:[%s5503_s1 + $0x140] sm:$0xff] }
 0x502   :  { %v2179_v3 = vadd.f32 %v4011_v49, %v2175_v39  ;;  %v2162_v6 = vpop.f32.mrb[31].mxu0  ;;  %v2189_v7 = vsel %vm148_vm1, %v2181_v46, 0.0 }
 0x503   :  { %v2178_v9 = vadd.f32 %v2175_v39, %v2162_v6  ;;  %2190 = vadd.xlane.f32.xlu1 %v2189_v7  ;;  %v2186_v12 = vsel %vm148_vm1, %v2180_v28, 0.0 }
 0x504   :  { %2187 = vadd.xlane.f32.xlu0 %v2186_v12  ;;  %v2183_v15 = vadd.f32 %v4575_v36, %v2179_v3  ;;  %v4208_v3 = vpack.c.bf16 %v2375_v40, %v2374_v53 }
 0x505   :  { %v2182_v18 = vadd.f32 %v2178_v9, %v4580_v37 }
 0x506   :  { %v2196_v17 = vsel %vm2195_vm11, %v2183_v15, 0.0 }
 0x507   :  { %2197 = vadd.xlane.f32.xlu1 %v2196_v17  ;;  %v2192_v31 = vsel %vm148_vm1, %v2182_v18, 0.0 }
 0x508   :  { %2193 = vadd.xlane.f32.xlu0 %v2192_v31  ;;  %v2394_v31 = vld [vmem:[%s5503_s1 + $0x150] sm:$0xff] }
 0x590   :  { %v2191_v32 = vpop.xlane.xlu1 %2190 }
 0x591   :  { %v2201_v11 = vmul.f32 0.0625, %v2191_v32  ;;  %v2188_v33 = vpop.xlane.xlu0 %2187  ;;  %v2395_v32 = vld [vmem:[%s5503_s1 + $0x158] sm:$0xff] }
 0x592   :  { %v2200_v56 = vmul.f32 0.0625, %v2188_v33 }
 0x593   :  { %v2205_v35 = vsub.f32 %v2181_v46, %v2201_v11  ;;  %v2393_v46 = vld [vmem:[%s5503_s1 + $0x148] sm:$0xff] }
 0x594   :  { %v2204_v38 = vsub.f32 %v2180_v28, %v2200_v56  ;;  %v2198_v58 = vpop.xlane.xlu1 %2197  ;;  %v4210_v12 = vpack.c.bf16 %v2393_v46, %v2392_v22 }
 0x595   :  { %v2203_v44 = vmul.f32 0.0625, %v2198_v58  ;;  %v2194_v30 = vpop.xlane.xlu0 %2193  ;;  %v2209_v26 = vmul.f32 %v2205_v35, %v2205_v35  ;;  %v2378_v58 = vld [vmem:[%s5503_s1 + $0xd0] sm:$0xff] }
 0x596   :  { %v2202_v24 = vmul.f32 0.0625, %v2194_v30  ;;  %v2208_v36 = vmul.f32 %v2204_v38, %v2204_v38  ;;  %v2396_v30 = vld [vmem:[%s5503_s1 + $0x160] sm:$0xff] }
 0x597   :  { %v5015_v47 = vsub.f32 %v2183_v15, %v2203_v44  ;;  %v2215_v37 = vsel %vm148_vm1, %v2209_v26, 0.0  ;;  %v2376_v15 = vld [vmem:[%s5503_s1 + $0xc0] sm:$0xff]  ;;  %v2379_v44 = vld [vmem:[%s5503_s1 + $0xd8] sm:$0xff]  ;;  %v2397_v26 = vld [vmem:[%s5503_s1 + $0x168] sm:$0xff] }
 0x598   :  { %v2206_v63 = vsub.f32 %v2182_v18, %v2202_v24  ;;  %2216 = vadd.xlane.f32.xlu1 %v2215_v37  ;;  %v2212_v41 = vsel %vm148_vm1, %v2208_v36, 0.0  ;;  %v2377_v18 = vld [vmem:[%s5503_s1 + $0xc8] sm:$0xff]  ;;  %v4216_v24 = vpack.c.bf16 %v2379_v44, %v2378_v58  ;;  %v4218_v37 = vpack.c.bf16 %v2397_v26, %v2396_v30 }
 0x599   :  { %2213 = vadd.xlane.f32.xlu0 %v2212_v41  ;;  %v2211_v20 = vmul.f32 %v5015_v47, %v5015_v47  ;;  %v4212_v11 = vpack.c.bf16 %v2377_v18, %v2376_v15  ;;  %v2381_v41 = vld [vmem:[%s5503_s1 + $0xe8] sm:$0xff] }
 0x59a   :  { %v2210_v48 = vmul.f32 %v2206_v63, %v2206_v63 }
 0x59b   :  { %v2221_v1 = vsel %vm2195_vm11, %v2211_v20, 0.0  ;;  %v2398_v20 = vld [vmem:[%s5503_s1 + $0x170] sm:$0xff] }
 0x59c   :  { %2222 = vadd.xlane.f32.xlu1 %v2221_v1  ;;  %v2218_v50 = vsel %vm148_vm1, %v2210_v48, 0.0  ;;  %v2399_v48 = vld [vmem:[%s5503_s1 + $0x178] sm:$0xff] }
 0x59d   :  { %2219 = vadd.xlane.f32.xlu0 %v2218_v50  ;;  %v4222_v4 = vpack.c.bf16 %v2399_v48, %v2398_v20 }
 0x625   :  { %v2217_v57 = vpop.xlane.xlu1 %2216 }
 0x626   :  { %v2225_v59 = vmul.f32 0.0625, %v2217_v57  ;;  %v2214_v42 = vpop.xlane.xlu0 %2213  ;;  %v2402_v57 = vld [vmem:[%s5503_s1 + $0x190] sm:$0xff] }
 0x627   :  { %v2224_v23 = vmul.f32 0.0625, %v2214_v42  ;;  %v4228_v42 = vpack.c.bf16 %v2385_v13, %v2384_v52 }
 0x628   :  { %v2229_v21 = vadd.f32 1e-05, %v2225_v59  ;;  %v2403_v59 = vld [vmem:[%s5503_s1 + $0x198] sm:$0xff] }
 0x629   :  { %v2228_v0 = vadd.f32 1e-05, %v2224_v23  ;;  %v2223_v45 = vpop.xlane.xlu1 %2222  ;;  %v4230_v23 = vpack.c.bf16 %v2403_v59, %v2402_v57 }
 0x62a   :  { %4417 = vrsqrt.f32 %v2229_v21  ;;  %v2227_v34 = vmul.f32 0.0625, %v2223_v45  ;;  %v2220_v55 = vpop.xlane.xlu0 %2219  ;;  %v2386_v21 = vld [vmem:[%s5503_s1 + $0x110] sm:$0xff] }
 0x62b   :  { %4419 = vrsqrt.f32 %v2228_v0  ;;  %v2226_v8 = vmul.f32 0.0625, %v2220_v55  ;;  %v2387_v0 = vld [vmem:[%s5503_s1 + $0x118] sm:$0xff]  ;;  %v2405_v55 = vld [vmem:[%s5503_s1 + $0x1a8] sm:$0xff] }
 0x62c   :  { %v2231_v60 = vadd.f32 1e-05, %v2227_v34  ;;  %v4232_v45 = vpack.c.bf16 %v2387_v0, %v2386_v21  ;;  %v2404_v34 = vld [vmem:[%s5503_s1 + $0x1a0] sm:$0xff] }
 0x62d   :  { %v2230_v61 = vadd.f32 1e-05, %v2226_v8  ;;  %v4234_v8 = vpack.c.bf16 %v2405_v55, %v2404_v34 }
 0x62f   :  { %4421 = vrsqrt.f32 %v2230_v61  ;;  %v2389_v61 = vld [vmem:[%s5503_s1 + $0x128] sm:$0xff] }
 0x630   :  { %4423 = vrsqrt.f32 %v2231_v60  ;;  %v2388_v60 = vld [vmem:[%s5503_s1 + $0x120] sm:$0xff] }
 0x634   :  { %v4418_v10 = vpop.eup %4417 }
 0x635   :  { %v4420_v54 = vpop.eup %4419  ;;  %v2237_v39 = vmul.f32 %v4418_v10, %v2205_v35  ;;  %v4236_v10 = vpack.c.bf16 %v2389_v61, %v2388_v60 }
 0x636   :  { %v2236_v29 = vmul.f32 %v4420_v54, %v2204_v38  ;;  %v4214_v38 = vpack.c.bf16 %v2395_v32, %v2394_v31  ;;  %v2255_v54 = vlaneseq }
 0x637   :  { %v2241_v7 = vmul.f32 %v2237_v39, %v2184_v62  ;;  %v3515_v39 = vld [vmem:[%s5506_s6 + $0x7] ss:$8 sm:$0x3] }
 0x638   :  { %v2240_v49 = vmul.f32 %v2236_v29, %v2184_v62 }
 0x639   :  { %v4422_v28 = vpop.eup %4421  ;;  %v5076_v33 = vadd.f32 %v2241_v7, %v2185_v2 }
 0x63a   :  { %v5059_v6 = vadd.f32 %v2240_v49, %v2185_v2  ;;  %v2238_v9 = vmul.f32 %v4422_v28, %v2206_v63  ;;  %v4424_v17 = vpop.eup %4423  ;;  %v2380_v63 = vld [vmem:[%s5503_s1 + $0xe0] sm:$0xff] }
 0x63b   :  { %v2239_v35 = vmul.f32 %v4424_v17, %v5015_v47  ;;  %v4220_v1 = vpack.c.bf16 %v2381_v41, %v2380_v63  ;;  %v2406_v41 = vld [vmem:[%s5506_s6 + $0x10] ss:$0 sm:$0xff] }
 0x63c   :  { %3516 = vmatmul.mubr.msk.f32.vlgmr.msra.gmra.mrb[32].mxu1 %vm148_vm1, %v5059_v6  ;;  %v2242_v56 = vmul.f32 %v2238_v9, %v2184_v62 }
 0x63d   :  { %2347 = vmatprep.mubr.f32.mxu1 %v4435_v43  ;;  %4209 = vmatpush3.bf16.msra.mxu1 %v4208_v3  ;;  %v2243_v47 = vmul.f32 %v2239_v35, %v2184_v62  ;;  %v5158_v62 = vshrl.u32 %v2255_v54, 7 }
 0x63e   :  { %4211 = vmatprep.subr.bf16.mxu1 %v4210_v12  ;;  %v5094_v36 = vadd.f32 %v2242_v56, %v2185_v2 }
 0x63f   :  { %v5111_v50 = vadd.f32 %v2243_v47, %v2185_v2  ;;  %v2257_v29 = vsub.s32 0, %v5158_v62  ;;  %v2261_v53 = vsub.s32 1, %v5158_v62  ;;  %v3098_v62 = vld [vmem:[%s5510_s5 + $0x68] sm:$0xff] }
 0x640   :  { %3517 = vmatmul.mubr.msk.f32.gmra.mrb[34].mxu1 %vm148_vm1, %v5076_v33 }
 0x641   :  { %2353 = vmatprep.mubr.f32.mxu1 %v4435_v43  ;;  %4213 = vmatpush3.bf16.msra.mxu1 %v4212_v11  ;;  %v2258_v40 = vrot.slane %v3515_v39, %v2257_v29  ;;  %v2262_v2 = vrot.slane %v3515_v39, %v2261_v53 }
 0x642   :  { %4215 = vmatprep.subr.bf16.mxu1 %v4214_v38 }
 0x644   :  { %3518 = vmatmul.mubr.msk.f32.gmra.mrb[36].mxu1 %vm148_vm1, %v5094_v36 }
 0x645   :  { %2359 = vmatprep.mubr.f32.mxu1 %v4435_v43  ;;  %4217 = vmatpush3.bf16.msra.mxu1 %v4216_v24 }
 0x646   :  { %4219 = vmatprep.subr.bf16.mxu1 %v4218_v37 }
 0x648   :  { %3519 = vmatmul.mubr.msk.f32.gmra.mrb[38].mxu1 %vm148_vm1, %v5111_v50 }
 0x649   :  { %4221 = vmatpush3.bf16.msra.mxu1 %v4220_v1 }
 0x64a   :  { %4223 = vmatprep.subr.bf16.mxu1 %v4222_v4 }
 0x64d   :  { %4225 = vmatpush3.bf16.msra.mxu1 %v4224_v14 }
 0x64e   :  { %4227 = vmatprep.subr.bf16.mxu1 %v4226_v19 }
 0x651   :  { %4229 = vmatpush3.bf16.msra.mxu1 %v4228_v42 }
 0x652   :  { %4231 = vmatprep.subr.bf16.mxu1 %v4230_v23 }
 0x655   :  { %4233 = vmatpush3.bf16.msra.mxu1 %v4232_v45 }
 0x656   :  { %4235 = vmatprep.subr.bf16.mxu1 %v4234_v8 }
 0x659   :  { %4237 = vmatpush3.bf16.msra.mxu1 %v4236_v10 }
 0x65a   :  { %4290 = vmatprep.subr.bf16.mxu1 %v4433_v25 }
 0x70f   :  { %v2343_v22 = vpop.f32.mrb[32].mxu1 }
 0x710   :  { %v2344_v46 = vadd.f32 %v2343_v22, %v2258_v40  ;;  %v2345_v49 = vpop.f32.mrb[33].mxu1 }
 0x711   :  { %v2346_v28 = vadd.f32 %v2345_v49, %v2262_v2 }
 0x712   :  { %v2366_v9 = vmax.f32 %v2344_v46, 0.0 }
 0x713   :  { %v2367_v3 = vmax.f32 %v2346_v28, 0.0  ;;  %v2349_v7 = vpop.f32.mrb[34].mxu1 }
 0x714   :  { %v2350_v12 = vadd.f32 %v2349_v7, %v2258_v40  ;;  %v2351_v15 = vpop.f32.mrb[35].mxu1 }
 0x715   :  { %v2352_v18 = vadd.f32 %v2351_v15, %v2262_v2  ;;  %2471 = vmatprep.mubr.f32.mxu1 %v2367_v3 }
 0x716   :  { %2472 = vmatmul.mubr.f32.vlgmr.msra.gmra.mrb[40].mxu1 %v2366_v9  ;;  %v2368_v32 = vmax.f32 %v2350_v12, 0.0 }
 0x717   :  { %v2369_v17 = vmax.f32 %v2352_v18, 0.0  ;;  %v2355_v31 = vpop.f32.mrb[36].mxu1 }
 0x718   :  { %v2356_v11 = vadd.f32 %v2355_v31, %v2258_v40  ;;  %v2357_v56 = vpop.f32.mrb[37].mxu1  ;;  %v2565_v31 = vld [vmem:[%s5508_s3 + $0x58] sm:$0xff] }
 0x719   :  { %v2358_v35 = vadd.f32 %v2357_v56, %v2262_v2  ;;  %2476 = vmatprep.mubr.f32.mxu1 %v2369_v17  ;;  %v2563_v17 = vld [vmem:[%s5508_s3 + $0x48] sm:$0xff]  ;;  %v2564_v56 = vld [vmem:[%s5508_s3 + $0x50] sm:$0xff] }
 0x71a   :  { %2477 = vmatmul.mubr.f32.gmra.mrb[42].mxu1 %v2368_v32  ;;  %v2370_v44 = vmax.f32 %v2356_v11, 0.0  ;;  %v4238_v32 = vpack.c.bf16 %v2565_v31, %v2563_v17  ;;  %v2562_v11 = vld [vmem:[%s5508_s3 + $0x40] sm:$0xff] }
 0x71b   :  { %v2371_v38 = vmax.f32 %v2358_v35, 0.0  ;;  %v2361_v58 = vpop.f32.mrb[38].mxu1  ;;  %v4240_v35 = vpack.c.bf16 %v2564_v56, %v2562_v11  ;;  %v2881_v31 = vld [vmem:[%s5508_s3 + $0xa0] sm:$0xff] }
 0x71c   :  { %v2362_v30 = vadd.f32 %v2361_v58, %v2258_v40  ;;  %v2363_v26 = vpop.f32.mrb[39].mxu1  ;;  %4239 = vmatprep.subr.bf16.mxu0 %v4238_v32  ;;  %v2561_v58 = vld [vmem:[%s5508_s3 + $0x38] sm:$0xff]  ;;  %v2883_v32 = vld [vmem:[%s5508_s3 + $0xb0] sm:$0xff] }
 0x71d   :  { %v2364_v24 = vadd.f32 %v2363_v26, %v2262_v2  ;;  %2481 = vmatprep.mubr.f32.mxu1 %v2371_v38  ;;  %4241 = vmatpush1.bf16.msra.mxu0 %v4240_v35  ;;  %v2559_v38 = vld [vmem:[%s5508_s3 + $0x28] sm:$0xff] }
 0x71e   :  { %2482 = vmatmul.mubr.f32.gmra.mrb[44].mxu1 %v2370_v44  ;;  %v2372_v37 = vmax.f32 %v2362_v30, 0.0  ;;  %v4242_v44 = vpack.c.bf16 %v2561_v58, %v2559_v38  ;;  %v2998_v35 = vld [vmem:[%s5509_s4 + $0x88] sm:$0xff]  ;;  %v4256_v58 = vpack.c.bf16 %v2883_v32, %v2881_v31  ;;  %v3085_v31 = vld [vmem:[%s5510_s5] sm:$0xff] }
 0x71f   :  { %v2373_v47 = vmax.f32 %v2364_v24, 0.0  ;;  %v3086_v32 = vld [vmem:[%s5510_s5 + $0x8] sm:$0xff] }
 0x720   :  { %4243 = vmatprep.subr.bf16.mxu0 %v4242_v44 }
 0x721   :  { %2486 = vmatprep.mubr.f32.mxu1 %v2373_v47 }
 0x722   :  { %2487 = vmatmul.mubr.f32.gmra.mrb[46].mxu1 %v2372_v37 }
 0x723   :  { %4044 = vmatprep.mubr.msk.f32.mxu1 %vm4434_vm3, %v4435_v43 }
 0x7e9   :  { %v3696_v63 = vpop.f32.mrb[40].mxu1 }
 0x7ea   :  { %v3697_v20 = vpop.f32.mrb[41].mxu1 }
 0x7eb   :  { %v3698_v48 = vadd.f32 %v3697_v20, %v3696_v63 }
 0x7ed   :  { %v2474_v1 = vadd.f32 %v3698_v48, %v2406_v41  ;;  %v3699_v4 = vpop.f32.mrb[42].mxu1  ;;  %v2496_v48 = vld [vmem:[%s5506_s6 + $0x11] ss:$0 sm:$0xff] }
 0x7ee   :  { %v3700_v5 = vpop.f32.mrb[43].mxu1 }
 0x7ef   :  { %v3701_v27 = vadd.f32 %v3700_v5, %v3699_v4  ;;  %v2492_v16 = vadd.f32 %v2474_v1, %v5059_v6 }
 0x7f1   :  { %v2479_v51 = vadd.f32 %v3701_v27, %v2406_v41  ;;  %v3702_v14 = vpop.f32.mrb[44].mxu1  ;;  %v2498_v19 = vsel %vm148_vm1, %v2492_v16, 0.0 }
 0x7f2   :  { %2499 = vadd.xlane.f32.xlu0 %v2498_v19  ;;  %v3703_v52 = vpop.f32.mrb[45].mxu1 }
 0x7f3   :  { %v3704_v13 = vadd.f32 %v3703_v52, %v3702_v14  ;;  %v2493_v57 = vadd.f32 %v2479_v51, %v5076_v33 }
 0x7f5   :  { %v2484_v59 = vadd.f32 %v3704_v13, %v2406_v41  ;;  %v3705_v42 = vpop.f32.mrb[46].mxu1  ;;  %v2501_v23 = vsel %vm148_vm1, %v2493_v57, 0.0 }
 0x7f6   :  { %2502 = vadd.xlane.f32.xlu1 %v2501_v23  ;;  %v3706_v21 = vpop.f32.mrb[47].mxu1 }
 0x7f7   :  { %v3707_v0 = vadd.f32 %v3706_v21, %v3705_v42  ;;  %v2494_v45 = vadd.f32 %v2484_v59, %v5094_v36  ;;  %v2558_v59 = vld [vmem:[%s5508_s3 + $0x20] sm:$0xff]  ;;  %v2560_v42 = vld [vmem:[%s5508_s3 + $0x30] sm:$0xff]  ;;  %v2719_v21 = vld [vmem:[%s5508_s3 + $0x68] sm:$0xff] }
 0x7f9   :  { %v2489_v34 = vadd.f32 %v3707_v0, %v2406_v41  ;;  %v2504_v6 = vsel %vm148_vm1, %v2494_v45, 0.0  ;;  %v2721_v0 = vld [vmem:[%s5508_s3 + $0x78] sm:$0xff] }
 0x7fa   :  { %2505 = vadd.xlane.f32.xlu0 %v2504_v6  ;;  %v4244_v6 = vpack.c.bf16 %v2560_v42, %v2558_v59  ;;  %v3004_v59 = vld [vmem:[%s5509_s4 + $0xb8] sm:$0xff] }
 0x7fb   :  { %v2495_v55 = vadd.f32 %v2489_v34, %v5111_v50 }
 0x7fd   :  { %v2507_v8 = vsel %vm2195_vm11, %v2495_v55, 0.0 }
 0x7fe   :  { %2508 = vadd.xlane.f32.xlu1 %v2507_v8  ;;  %v4246_v8 = vpack.c.bf16 %v2721_v0, %v2719_v21  ;;  %v2987_v21 = vld [vmem:[%s5509_s4 + $0x30] sm:$0xff]  ;;  %v2988_v0 = vld [vmem:[%s5509_s4 + $0x38] sm:$0xff] }
 0x87f   :  { %v2500_v60 = vpop.xlane.xlu0 %2499 }
 0x880   :  { %v2510_v33 = vmul.f32 0.0625, %v2500_v60 }
 0x882   :  { %v2514_v61 = vsub.f32 %v2492_v16, %v2510_v33  ;;  %v5218_v16 = vld [vmem:[%s5506_s6 + $0x12] ss:$0 sm:$0xff]  ;;  %v2718_v33 = vld [vmem:[%s5508_s3 + $0x60] sm:$0xff] }
 0x883   :  { %v2503_v10 = vpop.xlane.xlu1 %2502 }
 0x884   :  { %v2511_v54 = vmul.f32 0.0625, %v2503_v10  ;;  %v2518_v39 = vmul.f32 %v2514_v61, %v2514_v61  ;;  %v2799_v10 = vld [vmem:[%s5508_s3 + $0x88] sm:$0xff] }
 0x886   :  { %v2515_v40 = vsub.f32 %v2493_v57, %v2511_v54  ;;  %v2522_v2 = vsel %vm148_vm1, %v2518_v39, 0.0  ;;  %v2801_v54 = vld [vmem:[%s5508_s3 + $0x98] sm:$0xff] }
 0x887   :  { %2523 = vadd.xlane.f32.xlu0 %v2522_v2  ;;  %v2506_v36 = vpop.xlane.xlu0 %2505  ;;  %v4250_v2 = vpack.c.bf16 %v2801_v54, %v2799_v10 }
 0x888   :  { %v2512_v22 = vmul.f32 0.0625, %v2506_v36  ;;  %v2519_v46 = vmul.f32 %v2515_v40, %v2515_v40 }
 0x88a   :  { %v5183_v49 = vsub.f32 %v2494_v45, %v2512_v22  ;;  %v2525_v50 = vsel %vm148_vm1, %v2519_v46, 0.0  ;;  %v2798_v22 = vld [vmem:[%s5508_s3 + $0x80] sm:$0xff]  ;;  %v2800_v46 = vld [vmem:[%s5508_s3 + $0x90] sm:$0xff] }
 0x88b   :  { %2526 = vadd.xlane.f32.xlu1 %v2525_v50  ;;  %v2509_v28 = vpop.xlane.xlu1 %2508 }
 0x88c   :  { %v2513_v3 = vmul.f32 0.0625, %v2509_v28  ;;  %v2520_v7 = vmul.f32 %v5183_v49, %v5183_v49  ;;  %v2882_v28 = vld [vmem:[%s5508_s3 + $0xa8] sm:$0xff] }
 0x88e   :  { %v5188_v9 = vsub.f32 %v2495_v55, %v2513_v3  ;;  %v2528_v12 = vsel %vm148_vm1, %v2520_v7, 0.0  ;;  %v4252_v7 = vpack.c.bf16 %v2800_v46, %v2798_v22 }
 0x88f   :  { %2529 = vadd.xlane.f32.xlu0 %v2528_v12 }
 0x890   :  { %v2521_v15 = vmul.f32 %v5188_v9, %v5188_v9 }
 0x892   :  { %v2531_v18 = vsel %vm2195_vm11, %v2521_v15, 0.0 }
 0x893   :  { %2532 = vadd.xlane.f32.xlu1 %v2531_v18 }
 0x914   :  { %v2524_v30 = vpop.xlane.xlu0 %2523 }
 0x915   :  { %v2534_v26 = vmul.f32 0.0625, %v2524_v30 }
 0x917   :  { %v2538_v24 = vadd.f32 1e-05, %v2534_v26 }
 0x918   :  { %v2527_v47 = vpop.xlane.xlu1 %2526 }
 0x919   :  { %4425 = vrsqrt.f32 %v2538_v24  ;;  %v2535_v37 = vmul.f32 0.0625, %v2527_v47  ;;  %v2981_v24 = vld [vmem:[%s5509_s4] sm:$0xff]  ;;  %v2982_v47 = vld [vmem:[%s5509_s4 + $0x8] sm:$0xff] }
 0x91b   :  { %v2539_v63 = vadd.f32 1e-05, %v2535_v37 }
 0x91c   :  { %v2530_v41 = vpop.xlane.xlu0 %2529 }
 0x91d   :  { %4427 = vrsqrt.f32 %v2539_v63  ;;  %v2536_v1 = vmul.f32 0.0625, %v2530_v41  ;;  %v2999_v63 = vld [vmem:[%s5509_s4 + $0x90] sm:$0xff]  ;;  %v3000_v41 = vld [vmem:[%s5509_s4 + $0x98] sm:$0xff] }
 0x91f   :  { %v2540_v51 = vadd.f32 1e-05, %v2536_v1  ;;  %v4262_v1 = vpack.c.bf16 %v3000_v41, %v2999_v63  ;;  %v3095_v41 = vld [vmem:[%s5510_s5 + $0x50] sm:$0xff] }
 0x920   :  { %v2533_v19 = vpop.xlane.xlu1 %2532 }
 0x921   :  { %4429 = vrsqrt.f32 %v2540_v51  ;;  %v2537_v57 = vmul.f32 0.0625, %v2533_v19  ;;  %v3002_v51 = vld [vmem:[%s5509_s4 + $0xa8] sm:$0xff] }
 0x923   :  { %v4426_v20 = vpop.eup %4425  ;;  %v2541_v55 = vadd.f32 1e-05, %v2537_v57  ;;  %v3003_v57 = vld [vmem:[%s5509_s4 + $0xb0] sm:$0xff] }
 0x924   :  { %v2546_v4 = vmul.f32 %v4426_v20, %v2514_v61  ;;  %v2720_v61 = vld [vmem:[%s5508_s3 + $0x70] sm:$0xff] }
 0x925   :  { %4431 = vrsqrt.f32 %v2541_v55 }
 0x926   :  { %v2550_v5 = vmul.f32 %v2546_v4, %v2496_v48  ;;  %v2983_v4 = vld [vmem:[%s5509_s4 + $0x10] sm:$0xff] }
 0x927   :  { %v4428_v27 = vpop.eup %4427 }
 0x928   :  { %v2547_v14 = vmul.f32 %v4428_v27, %v2515_v40  ;;  %v2554_v13 = vadd.f32 %v2550_v5, %v5218_v16  ;;  %v4248_v40 = vpack.c.bf16 %v2720_v61, %v2718_v33  ;;  %v2984_v5 = vld [vmem:[%s5509_s4 + $0x18] sm:$0xff]  ;;  %v3007_v33 = vld [vmem:[%s5509_s4 + $0xd0] sm:$0xff] }
 0x929   :  { %v3008_v61 = vld [vmem:[%s5509_s4 + $0xd8] sm:$0xff] }
 0x92a   :  { %v2551_v52 = vmul.f32 %v2547_v14, %v2496_v48  ;;  %v2569_v45 = vrot.slane %v2554_v13, 5  ;;  %v4264_v14 = vpack.c.bf16 %v2984_v5, %v2983_v4  ;;  %v4278_v54 = vpack.c.bf16 %v3008_v61, %v3007_v33  ;;  %v3013_v33 = vld [vmem:[%s5506_s6 + $0x14] ss:$0 sm:$0xff] }
 0x92b   :  { %v4430_v39 = vpop.eup %4429 }
 0x92c   :  { %v2555_v23 = vadd.f32 %v2551_v52, %v5218_v16  ;;  %v2548_v36 = vmul.f32 %v4430_v39, %v5183_v49  ;;  %v2884_v49 = vld [vmem:[%s5508_s3 + $0xb8] sm:$0xff]  ;;  %v2985_v52 = vld [vmem:[%s5509_s4 + $0x20] sm:$0xff]  ;;  %v2991_v39 = vld [vmem:[%s5509_s4 + $0x50] sm:$0xff] }
 0x92d   :  { %v4254_v15 = vpack.c.bf16 %v2884_v49, %v2882_v28  ;;  %v2994_v28 = vld [vmem:[%s5509_s4 + $0x68] sm:$0xff] }
 0x92e   :  { %v2570_v34 = vrot.slane %v2555_v23, 5  ;;  %v2552_v50 = vmul.f32 %v2548_v36, %v2496_v48  ;;  %v2722_v12 = vrot.slane %v2555_v23, 2  ;;  %v2803_v38 = vrot.slane %v2555_v23, 7  ;;  %v3010_v36 = vld [vmem:[%s5509_s4 + $0xe8] sm:$0xff] }
 0x92f   :  { %v4432_v3 = vpop.eup %4431  ;;  %v4270_v23 = vpack.c.bf16 %v3004_v59, %v3003_v57  ;;  %v3100_v57 = vld [vmem:[%s5510_s5 + $0x78] sm:$0xff] }
 0x930   :  { %v2571_v60 = vsel %vm2568_vm12, %v2569_v45, %v2570_v34  ;;  %v2549_v18 = vmul.f32 %v4432_v3, %v5188_v9  ;;  %v2556_v17 = vadd.f32 %v2552_v50, %v5218_v16  ;;  %v2997_v9 = vld [vmem:[%s5509_s4 + $0x80] sm:$0xff]  ;;  %v3006_v34 = vld [vmem:[%s5509_s4 + $0xc8] sm:$0xff]  ;;  %v3011_v3 = vld [vmem:[%s5509_s4 + $0xf0] sm:$0xff] }
 0x931   :  { %3520 = vmatmul.mubr.msk.f32.vlgmr.msra.gmra.mrb[32].mxu0 %vm148_vm1, %v2571_v60  ;;  %v4258_v44 = vpack.c.bf16 %v2998_v35, %v2997_v9  ;;  %v3005_v45 = vld [vmem:[%s5509_s4 + $0xc0] sm:$0xff]  ;;  %v2990_v60 = vld [vmem:[%s5509_s4 + $0x48] sm:$0xff]  ;;  %v3088_v9 = vld [vmem:[%s5510_s5 + $0x18] sm:$0xff] }
 0x932   :  { %4245 = vmatpush1.bf16.msra.mxu0 %v4244_v6  ;;  %2711 = vmatprep.mubr.f32.mxu0 %v4435_v43  ;;  %v2804_v11 = vrot.slane %v2556_v17, 7  ;;  %v2553_v56 = vmul.f32 %v2549_v18, %v2496_v48  ;;  %v2886_v20 = vrot.slane %v2556_v17, 4  ;;  %v4260_v48 = vpack.c.bf16 %v2982_v47, %v2981_v24  ;;  %v2993_v50 = vld [vmem:[%s5509_s4 + $0x60] sm:$0xff]  ;;  %v2996_v18 = vld [vmem:[%s5509_s4 + $0x78] sm:$0xff] }
 0x933   :  { %4247 = vmatprep.subr.bf16.mxu0 %v4246_v8  ;;  %v4272_v6 = vpack.c.bf16 %v2988_v0, %v2987_v21  ;;  %v4274_v55 = vpack.c.bf16 %v3006_v34, %v3005_v45  ;;  %v2989_v8 = vld [vmem:[%s5509_s4 + $0x40] sm:$0xff]  ;;  %v4284_v49 = vpack.c.bf16 %v2994_v28, %v2993_v50  ;;  %v3176_v45 = vld [vmem:[%s5503_s1 + $0x1c8] sm:$0xff] }
 0x934   :  { %v2805_v30 = vsel %vm1474_vm6, %v2803_v38, %v2804_v11  ;;  %v2557_v26 = vadd.f32 %v2553_v56, %v5218_v16  ;;  %v3001_v16 = vld [vmem:[%s5509_s4 + $0xa0] sm:$0xff]  ;;  %v4276_v10 = vpack.c.bf16 %v2990_v60, %v2989_v8  ;;  %v3087_v11 = vld [vmem:[%s5510_s5 + $0x10] sm:$0xff]  ;;  %v4291_v56 = vpack.c.bf16 %v3086_v32, %v3085_v31 }
 0x935   :  { %v4266_v19 = vpack.c.bf16 %v3002_v51, %v3001_v16  ;;  %v4294_v35 = vpack.c.bf16 %v3088_v9, %v3087_v11  ;;  %v3089_v38 = vld [vmem:[%s5510_s5 + $0x20] sm:$0xff]  ;;  %v3334_v32 = vld [vmem:[%s5505_s2 + $0x50] sm:$0xf]  ;;  %v3259_v11 = vld [vmem:[%s5506_s6 + $0x17] ss:$0 sm:$0xff] }
 0x936   :  { %v2887_v37 = vrot.slane %v2557_v26, 4  ;;  %4292 = vmatpush3.bf16.msra.mxu1 %v4291_v56  ;;  %v3092_v26 = vld [vmem:[%s5510_s5 + $0x38] sm:$0xff]  ;;  %v3093_v47 = vld [vmem:[%s5510_s5 + $0x40] sm:$0xff] }
 0x937   :  { %4293 = vmatprep.subr.bf16.mxu1 %v4433_v25  ;;  %v3175_v21 = vld [vmem:[%s5503_s1 + $0x1c0] sm:$0xff] }
 0x938   :  { %v2888_v27 = vsel %vm1167_vm5, %v2886_v20, %v2887_v37  ;;  %v3094_v37 = vld [vmem:[%s5510_s5 + $0x48] sm:$0xff]  ;;  %v3096_v20 = vld [vmem:[%s5510_s5 + $0x58] sm:$0xff]  ;;  %v4318_v34 = vpack.c.bf16 %v3176_v45, %v3175_v21 }
 0x939   :  { %3521 = vmatmul.mubr.msk.f32.vlgmr.msra.gmra.mrb[32].mxu0 %vm148_vm1, %v2554_v13  ;;  %v2986_v13 = vld [vmem:[%s5509_s4 + $0x28] sm:$0xff]  ;;  %v4303_v63 = vpack.c.bf16 %v3094_v37, %v3093_v47 }
 0x93a   :  { %4249 = vmatpush1.bf16.msra.mxu0 %v4248_v40  ;;  %2789 = vmatprep.mubr.f32.mxu0 %v4435_v43  ;;  %v4268_v42 = vpack.c.bf16 %v2986_v13, %v2985_v52  ;;  %v2992_v40 = vld [vmem:[%s5509_s4 + $0x58] sm:$0xff]  ;;  %v3097_v13 = vld [vmem:[%s5510_s5 + $0x60] sm:$0xff] }
 0x93b   :  { %4251 = vmatprep.subr.bf16.mxu0 %v4250_v2  ;;  %v3009_v2 = vld [vmem:[%s5509_s4 + $0xe0] sm:$0xff]  ;;  %v4280_v22 = vpack.c.bf16 %v2992_v40, %v2991_v39  ;;  %4295 = vmatpush3.bf16.msra.mxu1 %v4294_v35 }
 0x93c   :  { %v4282_v46 = vpack.c.bf16 %v3010_v36, %v3009_v2  ;;  %4296 = vmatprep.subr.bf16.mxu1 %v4433_v25  ;;  %v3179_v40 = vld [vmem:[%s5503_s1 + $0x1e0] sm:$0xff]  ;;  %v3101_v36 = vld [vmem:[%s5506_s6 + $0x15] ss:$0 sm:$0xff] }
 0x941   :  { %3522 = vmatmul.mubr.msk.f32.vlgmr.msra.gmra.mrb[32].mxu0 %vm148_vm1, %v2722_v12 }
 0x942   :  { %4253 = vmatpush1.bf16.msra.mxu0 %v4252_v7  ;;  %2872 = vmatprep.mubr.f32.mxu0 %v4435_v43  ;;  %v3012_v7 = vld [vmem:[%s5509_s4 + $0xf8] sm:$0xff] }
 0x943   :  { %4255 = vmatprep.subr.bf16.mxu0 %v4254_v15  ;;  %v4286_v12 = vpack.c.bf16 %v3012_v7, %v3011_v3  ;;  %v2995_v15 = vld [vmem:[%s5509_s4 + $0x70] sm:$0xff]  ;;  %v3258_v3 = vld [vmem:[%s5505_s2 + $0x48] sm:$0xff] }
 0x944   :  { %v4288_v17 = vpack.c.bf16 %v2996_v18, %v2995_v15 }
 0x949   :  { %3523 = vmatmul.mubr.msk.f32.vlgmr.msra.gmra.mrb[32].mxu0 %vm148_vm1, %v2805_v30  ;;  %v3091_v30 = vld [vmem:[%s5510_s5 + $0x30] sm:$0xff] }
 0x94a   :  { %4257 = vmatpush1.bf16.msra.mxu0 %v4256_v58  ;;  %2955 = vmatprep.mubr.f32.mxu0 %v4435_v43  ;;  %v3090_v58 = vld [vmem:[%s5510_s5 + $0x28] sm:$0xff]  ;;  %v4300_v24 = vpack.c.bf16 %v3092_v26, %v3091_v30 }
 0x94b   :  { %4259 = vmatprep.subr.bf16.mxu0 %v4258_v44  ;;  %v4297_v44 = vpack.c.bf16 %v3090_v58, %v3089_v38 }
 0x94d   :  { %4298 = vmatpush3.bf16.msra.mxu1 %v4297_v44 }
 0x94e   :  { %4299 = vmatprep.subr.bf16.mxu1 %v4433_v25 }
 0x951   :  { %3524 = vmatmul.mubr.msk.f32.vlgmr.msra.gmra.mrb[32].mxu0 %vm148_vm1, %v2888_v27  ;;  %4301 = vmatpush3.bf16.msra.mxu1 %v4300_v24 }
 0x952   :  { %4261 = vmatpush3.bf16.msra.mxu0 %v4260_v48  ;;  %4302 = vmatprep.subr.bf16.mxu1 %v4433_v25  ;;  %v4306_v48 = vpack.c.bf16 %v3096_v20, %v3095_v41 }
 0x953   :  { %4263 = vmatprep.subr.bf16.mxu0 %v4262_v1  ;;  %v3525_v1 = vld [vmem:[%s5506_s6 + $0x13] ss:$8 sm:$0x3] }
 0x954   :  { %v2970_v4 = vrot.slane %v3525_v1, %v2257_v29  ;;  %v2974_v5 = vrot.slane %v3525_v1, %v2261_v53  ;;  %v4309_v29 = vpack.c.bf16 %v3098_v62, %v3097_v13  ;;  %v3099_v53 = vld [vmem:[%s5510_s5 + $0x70] sm:$0xff] }
 0x955   :  { %4304 = vmatpush3.bf16.msra.mxu1 %v4303_v63  ;;  %v4312_v59 = vpack.c.bf16 %v3100_v57, %v3099_v53 }
 0x956   :  { %4265 = vmatpush3.bf16.msra.mxu0 %v4264_v14  ;;  %4305 = vmatprep.subr.bf16.mxu1 %v4433_v25 }
 0x957   :  { %4267 = vmatprep.subr.bf16.mxu0 %v4266_v19 }
 0x959   :  { %4307 = vmatpush3.bf16.msra.mxu1 %v4306_v48 }
 0x95a   :  { %4269 = vmatpush3.bf16.msra.mxu0 %v4268_v42  ;;  %4308 = vmatprep.subr.bf16.mxu1 %v4433_v25  ;;  %v3173_v42 = vld [vmem:[%s5503_s1 + $0x1b0] sm:$0xff] }
 0x95b   :  { %4271 = vmatprep.subr.bf16.mxu0 %v4270_v23  ;;  %v3174_v23 = vld [vmem:[%s5503_s1 + $0x1b8] sm:$0xff] }
 0x95c   :  { %v4315_v0 = vpack.c.bf16 %v3174_v23, %v3173_v42 }
 0x95d   :  { %4310 = vmatpush3.bf16.msra.mxu1 %v4309_v29 }
 0x95e   :  { %4273 = vmatpush3.bf16.msra.mxu0 %v4272_v6  ;;  %4311 = vmatprep.subr.bf16.mxu1 %v4433_v25  ;;  %v3177_v6 = vld [vmem:[%s5503_s1 + $0x1d0] sm:$0xff] }
 0x95f   :  { %4275 = vmatprep.subr.bf16.mxu0 %v4274_v55  ;;  %v3178_v55 = vld [vmem:[%s5503_s1 + $0x1d8] sm:$0xff] }
 0x960   :  { %v4321_v8 = vpack.c.bf16 %v3178_v55, %v3177_v6 }
 0x961   :  { %4313 = vmatpush3.bf16.msra.mxu1 %v4312_v59 }
 0x962   :  { %4277 = vmatpush3.bf16.msra.mxu0 %v4276_v10  ;;  %4326 = vmatprep.subr.bf16.mxu1 %v4433_v25 }
 0x963   :  { %4279 = vmatprep.subr.bf16.mxu0 %v4278_v54 }
 0x966   :  { %4281 = vmatpush3.bf16.msra.mxu0 %v4280_v22 }
 0x967   :  { %4283 = vmatprep.subr.bf16.mxu0 %v4282_v46 }
 0x96a   :  { %4285 = vmatpush3.bf16.msra.mxu0 %v4284_v49  ;;  %v3257_v49 = vld [vmem:[%s5505_s2 + $0x40] sm:$0xff] }
 0x96b   :  { %4287 = vmatprep.subr.bf16.mxu0 %v4286_v12  ;;  %v4327_v7 = vpack.c.bf16 %v3258_v3, %v3257_v49  ;;  %v3181_v12 = vld [vmem:[%s5506_s6 + $0x16] ss:$0 sm:$0xff] }
 0x96e   :  { %4289 = vmatpush3.bf16.msra.mxu0 %v4288_v17 }
 0x96f   :  { %4314 = vmatprep.subr.bf16.mxu0 %v4433_v25 }
 0xa24   :  { %v2957_v27 = vpop.f32.mrb[32].mxu0 }
 0xa25   :  { %v2977_v16 = vadd.f32 %v2970_v4, %v2957_v27  ;;  %v2959_v51 = vpop.f32.mrb[33].mxu0 }
 0xa26   :  { %v2978_v14 = vadd.f32 %v2974_v5, %v2959_v51 }
 0xa27   :  { %v2979_v52 = vmax.f32 %v2977_v16, 0.0 }
 0xa28   :  { %v2980_v19 = vmax.f32 %v2978_v14, 0.0 }
 0xa2a   :  { %3078 = vmatprep.mubr.f32.mxu0 %v2980_v19 }
 0xa2b   :  { %3079 = vmatmul.mubr.f32.vlgmr.msra.gmra.mrb[34].mxu0 %v2979_v52 }
 0xa2c   :  { %4063 = vmatprep.mubr.msk.f32.mxu0 %vm4434_vm3, %v4435_v43  ;;  %4316 = vmatpush3.bf16.msra.mxu0 %v4315_v0 }
 0xa2d   :  { %4317 = vmatprep.subr.bf16.mxu0 %v4433_v25 }
 0xa30   :  { %4319 = vmatpush3.bf16.msra.mxu0 %v4318_v34 }
 0xa31   :  { %4320 = vmatprep.subr.bf16.mxu0 %v4433_v25 }
 0xa34   :  { %4322 = vmatpush3.bf16.msra.mxu0 %v4321_v8 }
 0xa35   :  { %4323 = vmatprep.subr.bf16.mxu0 %v4433_v25  ;;  %v3180_v25 = vld [vmem:[%s5503_s1 + $0x1e8] sm:$0xff] }
 0xa36   :  { %v4324_v2 = vpack.c.bf16 %v3180_v25, %v3179_v40 }
 0xa38   :  { %4325 = vmatpush3.bf16.msra.mxu0 %v4324_v2 }
 0xafe   :  { %v3740_v60 = vpop.f32.mrb[34].mxu0 }
 0xaff   :  { %v3741_v61 = vpop.f32.mrb[35].mxu0 }
 0xb00   :  { %v3742_v10 = vadd.f32 %v3741_v61, %v3740_v60 }
 0xb02   :  { %v3081_v54 = vadd.f32 %v3742_v10, %v3013_v33 }
 0xb04   :  { %v3084_v39 = vmax.f32 %v3081_v54, 0.0 }
 0xb06   :  { %4045 = vmatmul.mubr.f32.vlgmr.msra.gmra.mrb[48].mxu1 %v3084_v39 }
 0xb07   :  { %4070 = vmatprep.mubr.msk.f32.mxu1 %vm4434_vm3, %v4435_v43  ;;  %4328 = vmatpush3.bf16.msra.mxu1 %v4327_v7 }
 0xb08   :  { %4073 = vmatprep.subr.mxu1 %v4435_v43 }
 0xbd9   :  { %v3168_v22 = vpop.f32.mrb[48].mxu1 }
 0xbda   :  { %v3169_v46 = vadd.f32 %v3168_v22, %v3101_v36  ;;  %v4046_v50 = vpop.f32.mrb[49].mxu1 }
 0xbdc   :  { %v3172_v28 = vmax.f32 %v3169_v46, 0.0 }
 0xbde   :  { %4064 = vmatmul.mubr.msk.f32.vlgmr.msra.gmra.mrb[36].mxu0 %vm3182_vm13, %v3172_v28 }
 0xcb1   :  { %v3252_v15 = vpop.f32.mrb[36].mxu0 }
 0xcb2   :  { %v3253_v18 = vadd.f32 %v3252_v15, %v3181_v12  ;;  %v4065_v17 = vpop.f32.mrb[37].mxu0 }
 0xcb4   :  { %v3256_v31 = vmax.f32 %v3253_v18, 0.0 }
 0xcb6   :  { %4071 = vmatmul.mubr.msk.f32.vlgmr.msra.gmra.mrb[50].mxu1 %vm148_vm1, %v3256_v31 }
 0xcb7   :  { %4075 = vmatprep.mubr.msk.f32.mxu1 %vm4434_vm3, %v4435_v43  ;;  %4074 = vmatpush3.msk.msra.mxu1 %vm1167_vm5, %v3334_v32  ;;  %v3411_v43 = vld [vmem:[%s5506_s6 + $0x20] ss:$0 sm:$0xff] }
 0xd89   :  { %v3329_v56 = vpop.f32.mrb[50].mxu1 }
 0xd8a   :  { %v3330_v9 = vadd.f32 %v3329_v56, %v3259_v11  ;;  %v4072_v35 = vpop.f32.mrb[51].mxu1 }
 0xd8c   :  { %v3333_v38 = vmax.f32 %v3330_v9, 0.0 }
 0xd8e   :  { %4076 = vmatmul.mubr.msk.f32.vlgmr.msra.gmra.mrb[52].mxu1 %vm1154_vm4, %v3333_v38 }
 0xe61   :  { %v3407_v58 = vpop.f32.mrb[52].mxu1 }
 0xe62   :  { %v3412_v44 = vadd.f32 %v3411_v43, %v3407_v58  ;;  %v4077_v30 = vpop.f32.mrb[53].mxu1 }
 0xe64   :  { %3414 = vst.msk [vmem:[%s5511_s8] sm:$0x1f] %vm3413_vm14, %v3412_v44 }

</bundles_post_ra>
